<compile_context>
chip_gen: v7x
topology: tpu7x:2x2x1
jax: 0.10.0
libtpu: 0.0.40
codegen_flags: <defaults>
</compile_context>

<pallas_src>
import functools

import jax
import jax.numpy as jnp
from jax.experimental import pallas as pl
from jax.experimental.pallas import tpu as pltpu

SELU_ALPHA = 1.6732632423543772
SELU_SCALE = 1.0507009873554805

_VMEM = pl.BlockSpec(memory_space=pltpu.MemorySpace.VMEM)


def _selu(x):
    return SELU_SCALE * jnp.where(x > 0, x, SELU_ALPHA * (jnp.exp(x) - 1.0))


# ------------------------------ fused kernel ------------------------------- #

def _make_fused_kernel(num_layers, hidden, input_size, n_oi, n_ma):
    """Builds the fused forward kernel for static (L, H, in, #FCCN layers)."""
    L, H = num_layers, hidden

    def kernel(*refs):
        it = iter(refs)
        x_ref, h0_ref, c0_ref = next(it), next(it), next(it)
        lstm = [(next(it), next(it)) for _ in range(L)]
        oi = [(next(it), next(it)) for _ in range(n_oi)]
        ma = [(next(it), next(it)) for _ in range(n_ma)]
        out_ref, mem_out_ref = next(it), next(it)

        B = x_ref.shape[0]
        ma_w0, ma_b0 = ma[0]                        # (4LH, 4*mem), (1, 4*mem)
        # Memory-arranger layer-0 accumulator, fed chunk-by-chunk below so the
        # (B, 4LH) packed operand is never materialized via lane concats.
        m1 = jnp.zeros((B, ma_w0.shape[1]), jnp.float32)

        # ---- stacked single-step LSTM (eval: inter-layer dropout = id) ----
        layer_in = x_ref[...]                       # (B, input_size)
        for l in range(L):
            w_ref, b_ref = lstm[l]                  # w: (in_l + H, 4H)
            in_l = input_size if l == 0 else H
            h_prev = h0_ref[l]                      # (B, H)
            c_prev = c0_ref[l]
            # Two MXU dots on sublane-sliced weight views (offsets are
            # multiples of 8) instead of lane-concatenating [x, h].
            gates = (jnp.dot(layer_in, w_ref[0:in_l, :],
                             preferred_element_type=jnp.float32)
                     + jnp.dot(h_prev, w_ref[in_l:in_l + H, :],
                               preferred_element_type=jnp.float32)
                     + b_ref[...])
            i = jax.nn.sigmoid(gates[:, 0 * H:1 * H])
            f = jax.nn.sigmoid(gates[:, 1 * H:2 * H])
            g = jnp.tanh(gates[:, 2 * H:3 * H])
            o = jax.nn.sigmoid(gates[:, 3 * H:4 * H])
            c_new = f * c_prev + i * g
            h_new = o * jnp.tanh(c_new)

            # torch: cat([h0,c0,hn,cn], dim=2).permute(1,0,2).view(B,-1) @ W0
            # == Σ over layer-major chunks [h0_l, c0_l, hn_l, cn_l] of
            #    chunk @ W0[chunk_rows, :]  — accumulated directly on the MXU.
            off = l * 4 * H
            for k, chunk in enumerate((h_prev, c_prev, h_new, c_new)):
                m1 = m1 + jnp.dot(chunk,
                                  ma_w0[off + k * H: off + (k + 1) * H, :],
                                  preferred_element_type=jnp.float32)
            layer_in = h_new

        # ---- output interpreter: FCCN (SELU hidden) + final sigmoid ----
        # TODO(synk): LazyFCCN source not provided; modeled as a plain MLP
        # (Linear -> SELU per hidden layer, linear head).
        h = layer_in                                # == lstm_output.squeeze(1)
        for w_ref, b_ref in oi[:-1]:
            h = _selu(jnp.dot(h, w_ref[...],
                              preferred_element_type=jnp.float32) + b_ref[...])
        w_ref, b_ref = oi[-1]
        out_ref[...] = jax.nn.sigmoid(
            jnp.dot(h, w_ref[...], preferred_element_type=jnp.float32)
            + b_ref[...]).astype(out_ref.dtype)

        # ---- memory arranger: FCCN (SELU hidden) + final tanh ----
        m1 = m1 + ma_b0[...]                        # layer 0 pre-activation
        if n_ma == 1:
            mem_out_ref[...] = jnp.tanh(m1).astype(mem_out_ref.dtype)
        else:
            m = _selu(m1)
            for w_ref, b_ref in ma[1:-1]:
                m = _selu(jnp.dot(m, w_ref[...],
                                  preferred_element_type=jnp.float32)
                          + b_ref[...])
            w_ref, b_ref = ma[-1]
            mem_out_ref[...] = jnp.tanh(
                jnp.dot(m, w_ref[...], preferred_element_type=jnp.float32)
                + b_ref[...]).astype(mem_out_ref.dtype)

    return kernel


# -------------------------------- wrapper ---------------------------------- #

def step_time_lstm_forward(params, x, h0=None, c0=None, *, num_layers, hidden):
    B = x.shape[0]
    input_size = x.shape[-1]
    L, H = num_layers, hidden
    if h0 is None:
        h0 = jnp.zeros((L, B, H), jnp.float32)
    if c0 is None:
        c0 = jnp.zeros((L, B, H), jnp.float32)

    lstm, oi, ma = params["lstm"], params["out_interp"], params["mem_arr"]
    flat = [x[:, 0, :], h0, c0]
    for w, b in lstm + oi + ma:
        flat += [w, b]

    output_size = oi[-1][0].shape[1]
    memory_size = ma[-1][0].shape[1]                # == 2 * L * H

    kernel = _make_fused_kernel(L, H, input_size, len(oi), len(ma))
    out, mem_out = pl.pallas_call(
        kernel,
        out_shape=(jax.ShapeDtypeStruct((B, output_size), jnp.float32),
                   jax.ShapeDtypeStruct((B, memory_size), jnp.float32)),
        in_specs=[_VMEM] * len(flat),
        out_specs=(_VMEM, _VMEM),
    )(*flat)

    # torch.chunk(..., 2, dim=1) then .reshape(*h0.shape): row-major reinterpret.
    hn, cn = jnp.split(mem_out, 2, axis=1)
    return out, (hn.reshape(L, B, H), cn.reshape(L, B, H))


# --------------------------- pure-JAX reference ----------------------------- #

def reference_forward(params, x, h0, c0, *, num_layers, hidden):
    L, H = num_layers, hidden
    B = x.shape[0]
    hp = jax.lax.Precision.HIGHEST

    layer_in = x[:, 0, :]
    hs, cs = [], []
    for l in range(L):
        w, b = params["lstm"][l]
        gates = jnp.dot(jnp.concatenate([layer_in, h0[l]], axis=-1), w,
                        precision=hp) + b
        i = jax.nn.sigmoid(gates[:, 0 * H:1 * H])
        f = jax.nn.sigmoid(gates[:, 1 * H:2 * H])
        g = jnp.tanh(gates[:, 2 * H:3 * H])
        o = jax.nn.sigmoid(gates[:, 3 * H:4 * H])
        c_new = f * c0[l] + i * g
        h_new = o * jnp.tanh(c_new)
        hs.append(h_new); cs.append(c_new)
        layer_in = h_new
    hn, cn = jnp.stack(hs), jnp.stack(cs)

    def fccn(v, layers, final_act):
        for w, b in layers[:-1]:
            v = _selu(jnp.dot(v, w, precision=hp) + b)
        w, b = layers[-1]
        return final_act(jnp.dot(v, w, precision=hp) + b)

    out = fccn(layer_in, params["out_interp"], jax.nn.sigmoid)
    mem = jnp.concatenate([h0, c0, hn, cn], axis=2)          # (L, B, 4H)
    mem = jnp.transpose(mem, (1, 0, 2)).reshape(B, -1)
    mem_out = fccn(mem, params["mem_arr"], jnp.tanh)
    hn_o, cn_o = jnp.split(mem_out, 2, axis=1)
    return out, (hn_o.reshape(L, B, H), cn_o.reshape(L, B, H))


# ----------------------------- parameter init ------------------------------ #

def init_params(key, input_size, output_size, n_layers, hidden, fccn_arch):
    def uni(k, shape, bound):
        return jax.random.uniform(k, shape, jnp.float32, -bound, bound)

    k_lstm, k_out, k_mem = jax.random.split(key, 3)
    params = {}

    # LSTM weights (PyTorch init U(-1/sqrt(H), 1/sqrt(H))), pre-transposed to
    # (in, 4H) and pre-concatenated [w_ih; w_hh]; biases pre-summed.
    bound = 1.0 / (hidden ** 0.5)
    lstm_layers = []
    keys = jax.random.split(k_lstm, n_layers * 4)
    for l in range(n_layers):
        in_l = input_size if l == 0 else hidden
        kw1, kw2, kb1, kb2 = keys[4 * l:4 * l + 4]
        w_ih = uni(kw1, (in_l, 4 * hidden), bound)
        w_hh = uni(kw2, (hidden, 4 * hidden), bound)
        w = jnp.concatenate([w_ih, w_hh], axis=0)            # (in_l + H, 4H)
        b = uni(kb1, (1, 4 * hidden), bound) + uni(kb2, (1, 4 * hidden), bound)
        lstm_layers.append((w, b))
    params["lstm"] = lstm_layers

    def mlp(k, sizes):
        layers = []
        ks = jax.random.split(k, 2 * (len(sizes) - 1))
        for i in range(len(sizes) - 1):
            bd = 1.0 / (sizes[i] ** 0.5)
            layers.append((uni(ks[2 * i], (sizes[i], sizes[i + 1]), bd),
                           uni(ks[2 * i + 1], (1, sizes[i + 1]), bd)))
        return layers

    # output_interpreter: hidden -> fccn_arch -> output_size
    params["out_interp"] = mlp(k_out, [hidden] + list(fccn_arch) + [output_size])
    # memory_arranger: 2*mem -> [4*mem, 2*mem] -> mem, mem = hidden*n_layers*2
    mem = hidden * n_layers * 2
    params["mem_arr"] = mlp(k_mem, [2 * mem, 4 * mem, 2 * mem, mem])
    return params


# ---------------------------------- main ----------------------------------- #

if __name__ == "__main__":
    INPUT_SIZE, OUTPUT_SIZE = 16, 8
    N_LAYERS, HIDDEN = 2, 32
    FCCN_ARCH = (128, 64, 32)
    BATCH = 2

    key = jax.random.PRNGKey(0)
    kp, kx, kh, kc = jax.random.split(key, 4)
    params = init_params(kp, INPUT_SIZE, OUTPUT_SIZE, N_LAYERS, HIDDEN, FCCN_ARCH)

    x = jax.random.normal(kx, (BATCH, 1, INPUT_SIZE), jnp.float32)
    h0 = jax.random.normal(kh, (N_LAYERS, BATCH, HIDDEN), jnp.float32)
    c0 = jax.random.normal(kc, (N_LAYERS, BATCH, HIDDEN), jnp.float32)

    fwd = jax.jit(functools.partial(step_time_lstm_forward,
                                    num_layers=N_LAYERS, hidden=HIDDEN))
    out, (hn, cn) = fwd(params, x, h0, c0)
    jax.block_until_ready((out, hn, cn))

    assert out.shape == (BATCH, OUTPUT_SIZE)
    assert hn.shape == (N_LAYERS, BATCH, HIDDEN)
    assert cn.shape == (N_LAYERS, BATCH, HIDDEN)
    assert bool(jnp.all((out >= 0) & (out <= 1)))            # sigmoid range
    assert bool(jnp.all((hn >= -1) & (hn <= 1)))             # tanh range

    # correctness vs. pure-JAX reference (same weight layout, HIGHEST precision)
    ref_out, (ref_hn, ref_cn) = reference_forward(
        params, x, h0, c0, num_layers=N_LAYERS, hidden=HIDDEN)
    assert bool(jnp.allclose(out, ref_out, atol=2e-3, rtol=2e-3))
    assert bool(jnp.allclose(hn, ref_hn, atol=2e-3, rtol=2e-3))
    assert bool(jnp.allclose(cn, ref_cn, atol=2e-3, rtol=2e-3))

    print("KERNEL_OK")
</pallas_src>

<mosaic_0001>
module attributes {stable_mosaic.version = 11 : i64} {
  func.func @kernel(%arg0: memref<2x16xf32, #tpu.memory_space<vmem>>, %arg1: memref<2x2x32xf32, #tpu.memory_space<vmem>>, %arg2: memref<2x2x32xf32, #tpu.memory_space<vmem>>, %arg3: memref<48x128xf32, #tpu.memory_space<vmem>>, %arg4: memref<1x128xf32, #tpu.memory_space<vmem>>, %arg5: memref<64x128xf32, #tpu.memory_space<vmem>>, %arg6: memref<1x128xf32, #tpu.memory_space<vmem>>, %arg7: memref<32x128xf32, #tpu.memory_space<vmem>>, %arg8: memref<1x128xf32, #tpu.memory_space<vmem>>, %arg9: memref<128x64xf32, #tpu.memory_space<vmem>>, %arg10: memref<1x64xf32, #tpu.memory_space<vmem>>, %arg11: memref<64x32xf32, #tpu.memory_space<vmem>>, %arg12: memref<1x32xf32, #tpu.memory_space<vmem>>, %arg13: memref<32x8xf32, #tpu.memory_space<vmem>>, %arg14: memref<1x8xf32, #tpu.memory_space<vmem>>, %arg15: memref<256x512xf32, #tpu.memory_space<vmem>>, %arg16: memref<1x512xf32, #tpu.memory_space<vmem>>, %arg17: memref<512x256xf32, #tpu.memory_space<vmem>>, %arg18: memref<1x256xf32, #tpu.memory_space<vmem>>, %arg19: memref<256x128xf32, #tpu.memory_space<vmem>>, %arg20: memref<1x128xf32, #tpu.memory_space<vmem>>, %arg21: memref<2x8xf32, #tpu.memory_space<vmem>>, %arg22: memref<2x128xf32, #tpu.memory_space<vmem>>) attributes {dimension_semantics = [], scalar_prefetch = 0 : i64, scratch_operands = 0 : i64, tpu.core_type = #tpu.core_type<tc>} {
    %cst = arith.constant 0.000000e+00 : f32
    %0 = vector.broadcast %cst : f32 to vector<2x512xf32>
    %c0 = arith.constant 0 : index
    %c0_0 = arith.constant 0 : index
    %1 = vector.load %arg0[%c0, %c0_0] : memref<2x16xf32, #tpu.memory_space<vmem>>, vector<2x16xf32>
    %c0_1 = arith.constant 0 : index
    %c0_2 = arith.constant 0 : index
    %c0_3 = arith.constant 0 : index
    %2 = vector.load %arg1[%c0_1, %c0_2, %c0_3] : memref<2x2x32xf32, #tpu.memory_space<vmem>>, vector<1x2x32xf32>
    %3 = vector.shape_cast %2 : vector<1x2x32xf32> to vector<2x32xf32>
    %c0_4 = arith.constant 0 : index
    %c0_5 = arith.constant 0 : index
    %c0_6 = arith.constant 0 : index
    %4 = vector.load %arg2[%c0_4, %c0_5, %c0_6] : memref<2x2x32xf32, #tpu.memory_space<vmem>>, vector<1x2x32xf32>
    %5 = vector.shape_cast %4 : vector<1x2x32xf32> to vector<2x32xf32>
    %c0_7 = arith.constant 0 : index
    %c0_8 = arith.constant 0 : index
    %6 = vector.load %arg3[%c0_7, %c0_8] : memref<48x128xf32, #tpu.memory_space<vmem>>, vector<16x128xf32>
    %cst_9 = arith.constant dense<0.000000e+00> : vector<2x128xf32>
    %7 = tpu.matmul %1, %6, %cst_9 {dimension_numbers = #tpu.dot_dimension_numbers<[1], [0], [0], [1], [0, 0, 1, 1], [], []>} : vector<2x16xf32>, vector<16x128xf32>, vector<2x128xf32> -> vector<2x128xf32>
    %c16 = arith.constant 16 : index
    %c0_10 = arith.constant 0 : index
    %8 = vector.load %arg3[%c16, %c0_10] : memref<48x128xf32, #tpu.memory_space<vmem>>, vector<32x128xf32>
    %cst_11 = arith.constant dense<0.000000e+00> : vector<2x128xf32>
    %9 = tpu.matmul %3, %8, %cst_11 {dimension_numbers = #tpu.dot_dimension_numbers<[1], [0], [0], [1], [0, 0, 1, 1], [], []>} : vector<2x32xf32>, vector<32x128xf32>, vector<2x128xf32> -> vector<2x128xf32>
    %10 = arith.addf %7, %9 : vector<2x128xf32>
    %c0_12 = arith.constant 0 : index
    %c0_13 = arith.constant 0 : index
    %11 = vector.load %arg4[%c0_12, %c0_13] : memref<1x128xf32, #tpu.memory_space<vmem>>, vector<1x128xf32>
    %12 = vector.broadcast %11 : vector<1x128xf32> to vector<2x128xf32>
    %13 = arith.addf %10, %12 : vector<2x128xf32>
    %14 = vector.extract_strided_slice %13 {offsets = [0, 0], sizes = [2, 32], strides = [1, 1]} : vector<2x128xf32> to vector<2x32xf32>
    %15 = arith.negf %14 : vector<2x32xf32>
    %16 = math.exp %15 : vector<2x32xf32>
    %cst_14 = arith.constant 1.000000e+00 : f32
    %17 = vector.broadcast %cst_14 : f32 to vector<2x32xf32>
    %18 = arith.addf %17, %16 : vector<2x32xf32>
    %19 = arith.divf %17, %18 : vector<2x32xf32>
    %20 = vector.extract_strided_slice %13 {offsets = [0, 32], sizes = [2, 32], strides = [1, 1]} : vector<2x128xf32> to vector<2x32xf32>
    %21 = arith.negf %20 : vector<2x32xf32>
    %22 = math.exp %21 : vector<2x32xf32>
    %cst_15 = arith.constant 1.000000e+00 : f32
    %23 = vector.broadcast %cst_15 : f32 to vector<2x32xf32>
    %24 = arith.addf %23, %22 : vector<2x32xf32>
    %25 = arith.divf %23, %24 : vector<2x32xf32>
    %26 = vector.extract_strided_slice %13 {offsets = [0, 64], sizes = [2, 32], strides = [1, 1]} : vector<2x128xf32> to vector<2x32xf32>
    %27 = math.tanh %26 : vector<2x32xf32>
    %28 = vector.extract_strided_slice %13 {offsets = [0, 96], sizes = [2, 32], strides = [1, 1]} : vector<2x128xf32> to vector<2x32xf32>
    %29 = arith.negf %28 : vector<2x32xf32>
    %30 = math.exp %29 : vector<2x32xf32>
    %cst_16 = arith.constant 1.000000e+00 : f32
    %31 = vector.broadcast %cst_16 : f32 to vector<2x32xf32>
    %32 = arith.addf %31, %30 : vector<2x32xf32>
    %33 = arith.divf %31, %32 : vector<2x32xf32>
    %34 = arith.mulf %25, %5 : vector<2x32xf32>
    %35 = arith.mulf %19, %27 : vector<2x32xf32>
    %36 = arith.addf %34, %35 : vector<2x32xf32>
    %37 = math.tanh %36 : vector<2x32xf32>
    %38 = arith.mulf %33, %37 : vector<2x32xf32>
    %c0_17 = arith.constant 0 : index
    %c0_18 = arith.constant 0 : index
    %39 = vector.load %arg15[%c0_17, %c0_18] : memref<256x512xf32, #tpu.memory_space<vmem>>, vector<32x512xf32>
    %cst_19 = arith.constant dense<0.000000e+00> : vector<2x512xf32>
    %40 = tpu.matmul %3, %39, %cst_19 {dimension_numbers = #tpu.dot_dimension_numbers<[1], [0], [0], [1], [0, 0, 1, 1], [], []>} : vector<2x32xf32>, vector<32x512xf32>, vector<2x512xf32> -> vector<2x512xf32>
    %41 = arith.addf %0, %40 : vector<2x512xf32>
    %c32 = arith.constant 32 : index
    %c0_20 = arith.constant 0 : index
    %42 = vector.load %arg15[%c32, %c0_20] : memref<256x512xf32, #tpu.memory_space<vmem>>, vector<32x512xf32>
    %cst_21 = arith.constant dense<0.000000e+00> : vector<2x512xf32>
    %43 = tpu.matmul %5, %42, %cst_21 {dimension_numbers = #tpu.dot_dimension_numbers<[1], [0], [0], [1], [0, 0, 1, 1], [], []>} : vector<2x32xf32>, vector<32x512xf32>, vector<2x512xf32> -> vector<2x512xf32>
    %44 = arith.addf %41, %43 : vector<2x512xf32>
    %c64 = arith.constant 64 : index
    %c0_22 = arith.constant 0 : index
    %45 = vector.load %arg15[%c64, %c0_22] : memref<256x512xf32, #tpu.memory_space<vmem>>, vector<32x512xf32>
    %cst_23 = arith.constant dense<0.000000e+00> : vector<2x512xf32>
    %46 = tpu.matmul %38, %45, %cst_23 {dimension_numbers = #tpu.dot_dimension_numbers<[1], [0], [0], [1], [0, 0, 1, 1], [], []>} : vector<2x32xf32>, vector<32x512xf32>, vector<2x512xf32> -> vector<2x512xf32>
    %47 = arith.addf %44, %46 : vector<2x512xf32>
    %c96 = arith.constant 96 : index
    %c0_24 = arith.constant 0 : index
    %48 = vector.load %arg15[%c96, %c0_24] : memref<256x512xf32, #tpu.memory_space<vmem>>, vector<32x512xf32>
    %cst_25 = arith.constant dense<0.000000e+00> : vector<2x512xf32>
    %49 = tpu.matmul %36, %48, %cst_25 {dimension_numbers = #tpu.dot_dimension_numbers<[1], [0], [0], [1], [0, 0, 1, 1], [], []>} : vector<2x32xf32>, vector<32x512xf32>, vector<2x512xf32> -> vector<2x512xf32>
    %50 = arith.addf %47, %49 : vector<2x512xf32>
    %c1 = arith.constant 1 : index
    %c0_26 = arith.constant 0 : index
    %c0_27 = arith.constant 0 : index
    %51 = vector.load %arg1[%c1, %c0_26, %c0_27] : memref<2x2x32xf32, #tpu.memory_space<vmem>>, vector<1x2x32xf32>
    %52 = vector.shape_cast %51 : vector<1x2x32xf32> to vector<2x32xf32>
    %c1_28 = arith.constant 1 : index
    %c0_29 = arith.constant 0 : index
    %c0_30 = arith.constant 0 : index
    %53 = vector.load %arg2[%c1_28, %c0_29, %c0_30] : memref<2x2x32xf32, #tpu.memory_space<vmem>>, vector<1x2x32xf32>
    %54 = vector.shape_cast %53 : vector<1x2x32xf32> to vector<2x32xf32>
    %c0_31 = arith.constant 0 : index
    %c0_32 = arith.constant 0 : index
    %55 = vector.load %arg5[%c0_31, %c0_32] : memref<64x128xf32, #tpu.memory_space<vmem>>, vector<32x128xf32>
    %cst_33 = arith.constant dense<0.000000e+00> : vector<2x128xf32>
    %56 = tpu.matmul %38, %55, %cst_33 {dimension_numbers = #tpu.dot_dimension_numbers<[1], [0], [0], [1], [0, 0, 1, 1], [], []>} : vector<2x32xf32>, vector<32x128xf32>, vector<2x128xf32> -> vector<2x128xf32>
    %c32_34 = arith.constant 32 : index
    %c0_35 = arith.constant 0 : index
    %57 = vector.load %arg5[%c32_34, %c0_35] : memref<64x128xf32, #tpu.memory_space<vmem>>, vector<32x128xf32>
    %cst_36 = arith.constant dense<0.000000e+00> : vector<2x128xf32>
    %58 = tpu.matmul %52, %57, %cst_36 {dimension_numbers = #tpu.dot_dimension_numbers<[1], [0], [0], [1], [0, 0, 1, 1], [], []>} : vector<2x32xf32>, vector<32x128xf32>, vector<2x128xf32> -> vector<2x128xf32>
    %59 = arith.addf %56, %58 : vector<2x128xf32>
    %c0_37 = arith.constant 0 : index
    %c0_38 = arith.constant 0 : index
    %60 = vector.load %arg6[%c0_37, %c0_38] : memref<1x128xf32, #tpu.memory_space<vmem>>, vector<1x128xf32>
    %61 = vector.broadcast %60 : vector<1x128xf32> to vector<2x128xf32>
    %62 = arith.addf %59, %61 : vector<2x128xf32>
    %63 = vector.extract_strided_slice %62 {offsets = [0, 0], sizes = [2, 32], strides = [1, 1]} : vector<2x128xf32> to vector<2x32xf32>
    %64 = arith.negf %63 : vector<2x32xf32>
    %65 = math.exp %64 : vector<2x32xf32>
    %cst_39 = arith.constant 1.000000e+00 : f32
    %66 = vector.broadcast %cst_39 : f32 to vector<2x32xf32>
    %67 = arith.addf %66, %65 : vector<2x32xf32>
    %68 = arith.divf %66, %67 : vector<2x32xf32>
    %69 = vector.extract_strided_slice %62 {offsets = [0, 32], sizes = [2, 32], strides = [1, 1]} : vector<2x128xf32> to vector<2x32xf32>
    %70 = arith.negf %69 : vector<2x32xf32>
    %71 = math.exp %70 : vector<2x32xf32>
    %cst_40 = arith.constant 1.000000e+00 : f32
    %72 = vector.broadcast %cst_40 : f32 to vector<2x32xf32>
    %73 = arith.addf %72, %71 : vector<2x32xf32>
    %74 = arith.divf %72, %73 : vector<2x32xf32>
    %75 = vector.extract_strided_slice %62 {offsets = [0, 64], sizes = [2, 32], strides = [1, 1]} : vector<2x128xf32> to vector<2x32xf32>
    %76 = math.tanh %75 : vector<2x32xf32>
    %77 = vector.extract_strided_slice %62 {offsets = [0, 96], sizes = [2, 32], strides = [1, 1]} : vector<2x128xf32> to vector<2x32xf32>
    %78 = arith.negf %77 : vector<2x32xf32>
    %79 = math.exp %78 : vector<2x32xf32>
    %cst_41 = arith.constant 1.000000e+00 : f32
    %80 = vector.broadcast %cst_41 : f32 to vector<2x32xf32>
    %81 = arith.addf %80, %79 : vector<2x32xf32>
    %82 = arith.divf %80, %81 : vector<2x32xf32>
    %83 = arith.mulf %74, %54 : vector<2x32xf32>
    %84 = arith.mulf %68, %76 : vector<2x32xf32>
    %85 = arith.addf %83, %84 : vector<2x32xf32>
    %86 = math.tanh %85 : vector<2x32xf32>
    %87 = arith.mulf %82, %86 : vector<2x32xf32>
    %c128 = arith.constant 128 : index
    %c0_42 = arith.constant 0 : index
    %88 = vector.load %arg15[%c128, %c0_42] : memref<256x512xf32, #tpu.memory_space<vmem>>, vector<32x512xf32>
    %cst_43 = arith.constant dense<0.000000e+00> : vector<2x512xf32>
    %89 = tpu.matmul %52, %88, %cst_43 {dimension_numbers = #tpu.dot_dimension_numbers<[1], [0], [0], [1], [0, 0, 1, 1], [], []>} : vector<2x32xf32>, vector<32x512xf32>, vector<2x512xf32> -> vector<2x512xf32>
    %90 = arith.addf %50, %89 : vector<2x512xf32>
    %c160 = arith.constant 160 : index
    %c0_44 = arith.constant 0 : index
    %91 = vector.load %arg15[%c160, %c0_44] : memref<256x512xf32, #tpu.memory_space<vmem>>, vector<32x512xf32>
    %cst_45 = arith.constant dense<0.000000e+00> : vector<2x512xf32>
    %92 = tpu.matmul %54, %91, %cst_45 {dimension_numbers = #tpu.dot_dimension_numbers<[1], [0], [0], [1], [0, 0, 1, 1], [], []>} : vector<2x32xf32>, vector<32x512xf32>, vector<2x512xf32> -> vector<2x512xf32>
    %93 = arith.addf %90, %92 : vector<2x512xf32>
    %c192 = arith.constant 192 : index
    %c0_46 = arith.constant 0 : index
    %94 = vector.load %arg15[%c192, %c0_46] : memref<256x512xf32, #tpu.memory_space<vmem>>, vector<32x512xf32>
    %cst_47 = arith.constant dense<0.000000e+00> : vector<2x512xf32>
    %95 = tpu.matmul %87, %94, %cst_47 {dimension_numbers = #tpu.dot_dimension_numbers<[1], [0], [0], [1], [0, 0, 1, 1], [], []>} : vector<2x32xf32>, vector<32x512xf32>, vector<2x512xf32> -> vector<2x512xf32>
    %96 = arith.addf %93, %95 : vector<2x512xf32>
    %c224 = arith.constant 224 : index
    %c0_48 = arith.constant 0 : index
    %97 = vector.load %arg15[%c224, %c0_48] : memref<256x512xf32, #tpu.memory_space<vmem>>, vector<32x512xf32>
    %cst_49 = arith.constant dense<0.000000e+00> : vector<2x512xf32>
    %98 = tpu.matmul %85, %97, %cst_49 {dimension_numbers = #tpu.dot_dimension_numbers<[1], [0], [0], [1], [0, 0, 1, 1], [], []>} : vector<2x32xf32>, vector<32x512xf32>, vector<2x512xf32> -> vector<2x512xf32>
    %99 = arith.addf %96, %98 : vector<2x512xf32>
    %c0_50 = arith.constant 0 : index
    %c0_51 = arith.constant 0 : index
    %100 = vector.load %arg7[%c0_50, %c0_51] : memref<32x128xf32, #tpu.memory_space<vmem>>, vector<32x128xf32>
    %cst_52 = arith.constant dense<0.000000e+00> : vector<2x128xf32>
    %101 = tpu.matmul %87, %100, %cst_52 {dimension_numbers = #tpu.dot_dimension_numbers<[1], [0], [0], [1], [0, 0, 1, 1], [], []>} : vector<2x32xf32>, vector<32x128xf32>, vector<2x128xf32> -> vector<2x128xf32>
    %c0_53 = arith.constant 0 : index
    %c0_54 = arith.constant 0 : index
    %102 = vector.load %arg8[%c0_53, %c0_54] : memref<1x128xf32, #tpu.memory_space<vmem>>, vector<1x128xf32>
    %103 = vector.broadcast %102 : vector<1x128xf32> to vector<2x128xf32>
    %104 = arith.addf %101, %103 : vector<2x128xf32>
    %cst_55 = arith.constant 0.000000e+00 : f32
    %105 = vector.broadcast %cst_55 : f32 to vector<2x128xf32>
    %106 = arith.cmpf ogt, %104, %105 : vector<2x128xf32>
    %107 = math.exp %104 : vector<2x128xf32>
    %cst_56 = arith.constant 1.000000e+00 : f32
    %108 = vector.broadcast %cst_56 : f32 to vector<2x128xf32>
    %109 = arith.subf %107, %108 : vector<2x128xf32>
    %cst_57 = arith.constant 1.67326319 : f32
    %110 = vector.broadcast %cst_57 : f32 to vector<2x128xf32>
    %111 = arith.mulf %110, %109 : vector<2x128xf32>
    %112 = arith.select %106, %104, %111 : vector<2x128xi1>, vector<2x128xf32>
    %cst_58 = arith.constant 1.05070102 : f32
    %113 = vector.broadcast %cst_58 : f32 to vector<2x128xf32>
    %114 = arith.mulf %113, %112 : vector<2x128xf32>
    %c0_59 = arith.constant 0 : index
    %c0_60 = arith.constant 0 : index
    %115 = vector.load %arg9[%c0_59, %c0_60] : memref<128x64xf32, #tpu.memory_space<vmem>>, vector<128x64xf32>
    %cst_61 = arith.constant dense<0.000000e+00> : vector<2x64xf32>
    %116 = tpu.matmul %114, %115, %cst_61 {dimension_numbers = #tpu.dot_dimension_numbers<[1], [0], [0], [1], [0, 0, 1, 1], [], []>} : vector<2x128xf32>, vector<128x64xf32>, vector<2x64xf32> -> vector<2x64xf32>
    %c0_62 = arith.constant 0 : index
    %c0_63 = arith.constant 0 : index
    %117 = vector.load %arg10[%c0_62, %c0_63] : memref<1x64xf32, #tpu.memory_space<vmem>>, vector<1x64xf32>
    %118 = vector.broadcast %117 : vector<1x64xf32> to vector<2x64xf32>
    %119 = arith.addf %116, %118 : vector<2x64xf32>
    %cst_64 = arith.constant 0.000000e+00 : f32
    %120 = vector.broadcast %cst_64 : f32 to vector<2x64xf32>
    %121 = arith.cmpf ogt, %119, %120 : vector<2x64xf32>
    %122 = math.exp %119 : vector<2x64xf32>
    %cst_65 = arith.constant 1.000000e+00 : f32
    %123 = vector.broadcast %cst_65 : f32 to vector<2x64xf32>
    %124 = arith.subf %122, %123 : vector<2x64xf32>
    %cst_66 = arith.constant 1.67326319 : f32
    %125 = vector.broadcast %cst_66 : f32 to vector<2x64xf32>
    %126 = arith.mulf %125, %124 : vector<2x64xf32>
    %127 = arith.select %121, %119, %126 : vector<2x64xi1>, vector<2x64xf32>
    %cst_67 = arith.constant 1.05070102 : f32
    %128 = vector.broadcast %cst_67 : f32 to vector<2x64xf32>
    %129 = arith.mulf %128, %127 : vector<2x64xf32>
    %c0_68 = arith.constant 0 : index
    %c0_69 = arith.constant 0 : index
    %130 = vector.load %arg11[%c0_68, %c0_69] : memref<64x32xf32, #tpu.memory_space<vmem>>, vector<64x32xf32>
    %cst_70 = arith.constant dense<0.000000e+00> : vector<2x32xf32>
    %131 = tpu.matmul %129, %130, %cst_70 {dimension_numbers = #tpu.dot_dimension_numbers<[1], [0], [0], [1], [0, 0, 1, 1], [], []>} : vector<2x64xf32>, vector<64x32xf32>, vector<2x32xf32> -> vector<2x32xf32>
    %c0_71 = arith.constant 0 : index
    %c0_72 = arith.constant 0 : index
    %132 = vector.load %arg12[%c0_71, %c0_72] : memref<1x32xf32, #tpu.memory_space<vmem>>, vector<1x32xf32>
    %133 = vector.broadcast %132 : vector<1x32xf32> to vector<2x32xf32>
    %134 = arith.addf %131, %133 : vector<2x32xf32>
    %cst_73 = arith.constant 0.000000e+00 : f32
    %135 = vector.broadcast %cst_73 : f32 to vector<2x32xf32>
    %136 = arith.cmpf ogt, %134, %135 : vector<2x32xf32>
    %137 = math.exp %134 : vector<2x32xf32>
    %cst_74 = arith.constant 1.000000e+00 : f32
    %138 = vector.broadcast %cst_74 : f32 to vector<2x32xf32>
    %139 = arith.subf %137, %138 : vector<2x32xf32>
    %cst_75 = arith.constant 1.67326319 : f32
    %140 = vector.broadcast %cst_75 : f32 to vector<2x32xf32>
    %141 = arith.mulf %140, %139 : vector<2x32xf32>
    %142 = arith.select %136, %134, %141 : vector<2x32xi1>, vector<2x32xf32>
    %cst_76 = arith.constant 1.05070102 : f32
    %143 = vector.broadcast %cst_76 : f32 to vector<2x32xf32>
    %144 = arith.mulf %143, %142 : vector<2x32xf32>
    %c0_77 = arith.constant 0 : index
    %c0_78 = arith.constant 0 : index
    %145 = vector.load %arg13[%c0_77, %c0_78] : memref<32x8xf32, #tpu.memory_space<vmem>>, vector<32x8xf32>
    %cst_79 = arith.constant dense<0.000000e+00> : vector<2x8xf32>
    %146 = tpu.matmul %144, %145, %cst_79 {dimension_numbers = #tpu.dot_dimension_numbers<[1], [0], [0], [1], [0, 0, 1, 1], [], []>} : vector<2x32xf32>, vector<32x8xf32>, vector<2x8xf32> -> vector<2x8xf32>
    %c0_80 = arith.constant 0 : index
    %c0_81 = arith.constant 0 : index
    %147 = vector.load %arg14[%c0_80, %c0_81] : memref<1x8xf32, #tpu.memory_space<vmem>>, vector<1x8xf32>
    %148 = vector.broadcast %147 : vector<1x8xf32> to vector<2x8xf32>
    %149 = arith.addf %146, %148 : vector<2x8xf32>
    %150 = arith.negf %149 : vector<2x8xf32>
    %151 = math.exp %150 : vector<2x8xf32>
    %cst_82 = arith.constant 1.000000e+00 : f32
    %152 = vector.broadcast %cst_82 : f32 to vector<2x8xf32>
    %153 = arith.addf %152, %151 : vector<2x8xf32>
    %154 = arith.divf %152, %153 : vector<2x8xf32>
    %c0_83 = arith.constant 0 : index
    %c0_84 = arith.constant 0 : index
    %155 = vector.load %arg21[%c0_83, %c0_84] : memref<2x8xf32, #tpu.memory_space<vmem>>, vector<2x8xf32>
    tpu.vector_store %arg21[%c0_83, %c0_84], %154 {strides = array<i32>} : memref<2x8xf32, #tpu.memory_space<vmem>>, vector<2x8xf32>,
    %c0_85 = arith.constant 0 : index
    %c0_86 = arith.constant 0 : index
    %156 = vector.load %arg16[%c0_85, %c0_86] : memref<1x512xf32, #tpu.memory_space<vmem>>, vector<1x512xf32>
    %157 = vector.broadcast %156 : vector<1x512xf32> to vector<2x512xf32>
    %158 = arith.addf %99, %157 : vector<2x512xf32>
    %cst_87 = arith.constant 0.000000e+00 : f32
    %159 = vector.broadcast %cst_87 : f32 to vector<2x512xf32>
    %160 = arith.cmpf ogt, %158, %159 : vector<2x512xf32>
    %161 = math.exp %158 : vector<2x512xf32>
    %cst_88 = arith.constant 1.000000e+00 : f32
    %162 = vector.broadcast %cst_88 : f32 to vector<2x512xf32>
    %163 = arith.subf %161, %162 : vector<2x512xf32>
    %cst_89 = arith.constant 1.67326319 : f32
    %164 = vector.broadcast %cst_89 : f32 to vector<2x512xf32>
    %165 = arith.mulf %164, %163 : vector<2x512xf32>
    %166 = arith.select %160, %158, %165 : vector<2x512xi1>, vector<2x512xf32>
    %cst_90 = arith.constant 1.05070102 : f32
    %167 = vector.broadcast %cst_90 : f32 to vector<2x512xf32>
    %168 = arith.mulf %167, %166 : vector<2x512xf32>
    %c0_91 = arith.constant 0 : index
    %c0_92 = arith.constant 0 : index
    %169 = vector.load %arg17[%c0_91, %c0_92] : memref<512x256xf32, #tpu.memory_space<vmem>>, vector<512x256xf32>
    %cst_93 = arith.constant dense<0.000000e+00> : vector<2x256xf32>
    %170 = tpu.matmul %168, %169, %cst_93 {dimension_numbers = #tpu.dot_dimension_numbers<[1], [0], [0], [1], [0, 0, 1, 1], [], []>} : vector<2x512xf32>, vector<512x256xf32>, vector<2x256xf32> -> vector<2x256xf32>
    %c0_94 = arith.constant 0 : index
    %c0_95 = arith.constant 0 : index
    %171 = vector.load %arg18[%c0_94, %c0_95] : memref<1x256xf32, #tpu.memory_space<vmem>>, vector<1x256xf32>
    %172 = vector.broadcast %171 : vector<1x256xf32> to vector<2x256xf32>
    %173 = arith.addf %170, %172 : vector<2x256xf32>
    %cst_96 = arith.constant 0.000000e+00 : f32
    %174 = vector.broadcast %cst_96 : f32 to vector<2x256xf32>
    %175 = arith.cmpf ogt, %173, %174 : vector<2x256xf32>
    %176 = math.exp %173 : vector<2x256xf32>
    %cst_97 = arith.constant 1.000000e+00 : f32
    %177 = vector.broadcast %cst_97 : f32 to vector<2x256xf32>
    %178 = arith.subf %176, %177 : vector<2x256xf32>
    %cst_98 = arith.constant 1.67326319 : f32
    %179 = vector.broadcast %cst_98 : f32 to vector<2x256xf32>
    %180 = arith.mulf %179, %178 : vector<2x256xf32>
    %181 = arith.select %175, %173, %180 : vector<2x256xi1>, vector<2x256xf32>
    %cst_99 = arith.constant 1.05070102 : f32
    %182 = vector.broadcast %cst_99 : f32 to vector<2x256xf32>
    %183 = arith.mulf %182, %181 : vector<2x256xf32>
    %c0_100 = arith.constant 0 : index
    %c0_101 = arith.constant 0 : index
    %184 = vector.load %arg19[%c0_100, %c0_101] : memref<256x128xf32, #tpu.memory_space<vmem>>, vector<256x128xf32>
    %cst_102 = arith.constant dense<0.000000e+00> : vector<2x128xf32>
    %185 = tpu.matmul %183, %184, %cst_102 {dimension_numbers = #tpu.dot_dimension_numbers<[1], [0], [0], [1], [0, 0, 1, 1], [], []>} : vector<2x256xf32>, vector<256x128xf32>, vector<2x128xf32> -> vector<2x128xf32>
    %c0_103 = arith.constant 0 : index
    %c0_104 = arith.constant 0 : index
    %186 = vector.load %arg20[%c0_103, %c0_104] : memref<1x128xf32, #tpu.memory_space<vmem>>, vector<1x128xf32>
    %187 = vector.broadcast %186 : vector<1x128xf32> to vector<2x128xf32>
    %188 = arith.addf %185, %187 : vector<2x128xf32>
    %189 = math.tanh %188 : vector<2x128xf32>
    %c0_105 = arith.constant 0 : index
    %c0_106 = arith.constant 0 : index
    %190 = vector.load %arg22[%c0_105, %c0_106] : memref<2x128xf32, #tpu.memory_space<vmem>>, vector<2x128xf32>
    tpu.vector_store %arg22[%c0_105, %c0_106], %189 {strides = array<i32>} : memref<2x128xf32, #tpu.memory_space<vmem>>, vector<2x128xf32>,
    return
  }
}

</mosaic_0001>

<bundles_post_ra>
// kernel: step_time_lstm_forward.1
= control target key start
LH: loop header
LB: loop body
LE: loop exit
PB: predicated region body
PF: predicated region fallthrough
CT: control target
= control target key end

     0   :  { %s4557_s0 = inlined_call_operand.hbm [shape: f32[2,16], index: 0, kind: input, shape index: {}]   ;;  %s4558_s1 = inlined_call_operand.vmem [shape: f32[2,2,32], index: 1, kind: input, shape index: {}]   ;;  %s4559_s2 = inlined_call_operand.vmem [shape: f32[2,2,32], index: 2, kind: input, shape index: {}]   ;;  %s4560_s3 = inlined_call_operand.hbm [shape: f32[48,128], index: 3, kind: input, shape index: {}]   ;;  %s4561_s4 = inlined_call_operand.hbm [shape: f32[1,128], index: 4, kind: input, shape index: {}]   ;;  %s4562_s5 = inlined_call_operand.hbm [shape: f32[64,128], index: 5, kind: input, shape index: {}]   ;;  %s4563_s6 = inlined_call_operand.hbm [shape: f32[1,128], index: 6, kind: input, shape index: {}]   ;;  %s4564_s7 = inlined_call_operand.vmem [shape: f32[32,128], index: 7, kind: input, shape index: {}]   ;;  %s4565_s8 = inlined_call_operand.hbm [shape: f32[1,128], index: 8, kind: input, shape index: {}]   ;;  %s4566_s9 = inlined_call_operand.vmem [shape: f32[128,64], index: 9, kind: input, shape index: {}]   ;;  %s4567_s10 = inlined_call_operand.hbm [shape: f32[1,64], index: 10, kind: input, shape index: {}]   ;;  %s4568_s11 = inlined_call_operand.vmem [shape: f32[64,32], index: 11, kind: input, shape index: {}]   ;;  %s4569_s12 = inlined_call_operand.hbm [shape: f32[1,32], index: 12, kind: input, shape index: {}]   ;;  %s4570_s13 = inlined_call_operand.vmem [shape: f32[32,8], index: 13, kind: input, shape index: {}]   ;;  %s4571_s14 = inlined_call_operand.hbm [shape: f32[1,8], index: 14, kind: input, shape index: {}]   ;;  %s4572_s15 = inlined_call_operand.hbm [shape: f32[256,512], index: 15, kind: input, shape index: {}]   ;;  %s4573_s16 = inlined_call_operand.hbm [shape: f32[1,512], index: 16, kind: input, shape index: {}]   ;;  %s4574_s17 = inlined_call_operand.hbm [shape: f32[512,256], index: 17, kind: input, shape index: {}]   ;;  %s4575_s18 = inlined_call_operand.hbm [shape: f32[1,256], index: 18, kind: input, shape index: {}]   ;;  %s4576_s19 = inlined_call_operand.vmem [shape: f32[256,128], index: 19, kind: input, shape index: {}]   ;;  %s4577_s20 = inlined_call_operand.hbm [shape: f32[1,128], index: 20, kind: input, shape index: {}]   ;;  %s4578_s21 = inlined_call_operand.hbm [shape: f32[2,8], index: 21, kind: output, shape index: {0}]   ;;  %s4579_s22 = inlined_call_operand.vmem [shape: f32[2,128], index: 22, kind: output, shape index: {1}]  }
   0x1   :  { %4589 = sst [smem:[#allocation35_spill]] %s4557_s0 }
   0x2   :  { %4590 = sst [smem:[#allocation36_spill]] %s4558_s1 }
   0x3   :  { %4591 = sst [smem:[#allocation37_spill]] %s4559_s2 }
   0x4   :  { %4592 = sst [smem:[#allocation38_spill]] %s4560_s3 }
   0x5   :  { %4593 = sst [smem:[#allocation39_spill]] %s4561_s4 }
   0x6   :  { %4594 = sst [smem:[#allocation40_spill]] %s4562_s5 }
   0x7   :  { %4595 = sst [smem:[#allocation41_spill]] %s4563_s6 }
   0x8   :  { %4596 = sst [smem:[#allocation42_spill]] %s4576_s19 }
   0x9   :  { %4597 = sst [smem:[#allocation43_spill]] %s4578_s21 }
   0xa   :  { %4598 = sst [smem:[#allocation44_spill]] %s4579_s22 }
   0xb   :  { %28 = vsyncpa [#allocation3], 0 }
   0xc   :  { %29 = vsyncpa [#allocation6], 0 }
   0xd   :  { %30 = vsyncpa [#allocation9], 0 }
   0xe   :  { %31 = vsyncpa [#allocation12], 0 }
   0xf   :  { %32 = vsyncpa [#allocation15], 0 }
  0x10   :  { %33 = vsyncpa [#allocation18], 0 }
  0x11   :  { %34 = vsyncpa [#allocation21], 0 }
  0x12   :  { %35 = vsyncpa [#allocation24], 0 }
  0x13   :  { %36 = vsyncpa [#allocation4], 0  ;;  %s3852_s3 = smov [#allocation5]   ;;  %s4599_s4 = sld [smem:[#allocation38_spill]] }
  0x14   :  { %s56_s28 = sshll.u32 %s3852_s3, 4  ;;  %s57_s28 = int_to_ptr.vmem [resolvable:$true] %s56_s28 }
  0x19   :  { %s3504_s0 = scalar_lea.hbm %s4599_s4, 768 }
  0x1a   :  { %p3505_p0 = scmp.ne.s32.totalorder %s4599_s4, %s3504_s0  ;;  %p3508_p1 = scmp.lt.u32.totalorder %s3504_s0, %s4599_s4 }
  0x1c   :  { %p3510_p2 = pnand %p3508_p1, %p3505_p0 }
  0x1e   :  { %3513 = shalt.err (!%p3510_p2)
}
  0x1f   :  { %s3514_s6 = scalar_lea.vmem %s57_s28, 768  ;;  %p3519_p4 = scmp.lt.s32.totalorder %s57_s28, %s57_s28 }
  0x20   :  { %p3515_p3 = scmp.ne.s32.totalorder %s57_s28, %s3514_s6  ;;  %p3520_p5 = scmp.lt.s32.totalorder %s3514_s6, %s3514_s6 }
  0x22   :  { %p3521_p6 = por %p3520_p5, %p3519_p4 }
  0x24   :  { %p3522_p7 = pnand %p3521_p6, %p3515_p3 }
  0x26   :  { %3525 = shalt.err (!%p3522_p7)
}
  0x27   :  { %s3853_s25 = smov 128   ;;  %s3854_s26 = smov 8  }
  0x28   :  { %62 = dma.hbm_to_vmem [thread:$0]  %s4599_s4, 768, %s57_s28, [#allocation6], %s3853_s25, %s3853_s25, %s3854_s26  }
  0x29   :  { %s3855_s3 = smov [#allocation8]   ;;  %s3856_s30 = smov [#allocation11]  }
  0x2a   :  { %s78_s29 = sshll.u32 %s3855_s3, 4  ;;  %s103_s0 = sshll.u32 %s3856_s30, 4  ;;  %s79_s29 = int_to_ptr.vmem [resolvable:$true] %s78_s29  ;;  %s104_s0 = int_to_ptr.vmem [resolvable:$true] %s103_s0 }
  0x2b   :  { %s4600_s5 = sld [smem:[#allocation40_spill]] }
  0x31   :  { %s3526_s24 = scalar_lea.hbm %s4600_s5, 1024 }
  0x32   :  { %p3527_p8 = scmp.ne.s32.totalorder %s4600_s5, %s3526_s24  ;;  %p3530_p9 = scmp.lt.u32.totalorder %s3526_s24, %s4600_s5 }
  0x34   :  { %p3532_p10 = pnand %p3530_p9, %p3527_p8 }
  0x36   :  { %3535 = shalt.err (!%p3532_p10)
}
  0x37   :  { %s3536_s28 = scalar_lea.vmem %s79_s29, 1024  ;;  %p3541_p12 = scmp.lt.s32.totalorder %s79_s29, %s79_s29 }
  0x38   :  { %p3537_p11 = scmp.ne.s32.totalorder %s79_s29, %s3536_s28  ;;  %p3542_p13 = scmp.lt.s32.totalorder %s3536_s28, %s3536_s28 }
  0x3a   :  { %p3543_p0 = por %p3542_p13, %p3541_p12 }
  0x3c   :  { %p3544_p1 = pnand %p3543_p0, %p3537_p11 }
  0x3e   :  { %3547 = shalt.err (!%p3544_p1)
}
  0x3f   :  { %84 = dma.hbm_to_vmem [thread:$0]  %s4600_s5, 1024, %s79_s29, [#allocation9], %s3853_s25, %s3853_s25, %s3854_s26  }
  0x40   :  { %s3548_s3 = scalar_lea.hbm %s4565_s8, 16 }
  0x41   :  { %p3549_p2 = scmp.ne.s32.totalorder %s4565_s8, %s3548_s3  ;;  %p3552_p3 = scmp.lt.u32.totalorder %s3548_s3, %s4565_s8 }
  0x43   :  { %p3554_p4 = pnand %p3552_p3, %p3549_p2 }
  0x45   :  { %3557 = shalt.err (!%p3554_p4)
}
  0x46   :  { %s3558_s1 = scalar_lea.vmem %s104_s0, 16  ;;  %s3562_s24 = scalar_lea.vmem %s104_s0, 32 }
  0x47   :  { %p3559_p5 = scmp.ne.s32.totalorder %s104_s0, %s3558_s1  ;;  %p3563_p6 = scmp.lt.s32.totalorder %s104_s0, %s104_s0 }
  0x48   :  { %p3564_p7 = scmp.lt.s32.totalorder %s3562_s24, %s3558_s1 }
  0x4a   :  { %p3565_p8 = por %p3564_p7, %p3563_p6 }
  0x4c   :  { %p3566_p9 = pnand %p3565_p8, %p3559_p5 }
  0x4e   :  { %3569 = shalt.err (!%p3566_p9)
}
  0x4f   :  { %106 = dma.hbm_to_vmem [thread:$0]  %s4565_s8, 16, %s104_s0, [#allocation12]  }
  0x50   :  { %s3857_s29 = smov [#allocation14]   ;;  %s3858_s6 = smov [#allocation17]  }
  0x51   :  { %s127_s5 = sshll.u32 %s3857_s29, 4  ;;  %s148_s28 = sshll.u32 %s3858_s6, 4  ;;  %s128_s5 = int_to_ptr.vmem [resolvable:$true] %s127_s5  ;;  %s149_s28 = int_to_ptr.vmem [resolvable:$true] %s148_s28 }
  0x52   :  { %s3570_s22 = scalar_lea.hbm %s4569_s12, 16 }
  0x53   :  { %p3571_p10 = scmp.ne.s32.totalorder %s4569_s12, %s3570_s22  ;;  %p3574_p11 = scmp.lt.u32.totalorder %s3570_s22, %s4569_s12 }
  0x55   :  { %p3576_p12 = pnand %p3574_p11, %p3571_p10 }
  0x57   :  { %3579 = shalt.err (!%p3576_p12)
}
  0x58   :  { %s3580_s8 = scalar_lea.vmem %s128_s5, 16  ;;  %s3584_s0 = scalar_lea.vmem %s128_s5, 32 }
  0x59   :  { %p3581_p13 = scmp.ne.s32.totalorder %s128_s5, %s3580_s8  ;;  %p3585_p0 = scmp.lt.s32.totalorder %s128_s5, %s128_s5 }
  0x5a   :  { %p3586_p1 = scmp.lt.s32.totalorder %s3584_s0, %s3580_s8 }
  0x5c   :  { %p3587_p2 = por %p3586_p1, %p3585_p0 }
  0x5e   :  { %p3588_p3 = pnand %p3587_p2, %p3581_p13 }
  0x60   :  { %3591 = shalt.err (!%p3588_p3)
}
  0x61   :  { %130 = dma.hbm_to_vmem [thread:$0]  %s4569_s12, 16, %s128_s5, [#allocation15]  }
  0x62   :  { %s3592_s25 = scalar_lea.hbm %s4572_s15, 16384 }
  0x63   :  { %p3593_p4 = scmp.ne.s32.totalorder %s4572_s15, %s3592_s25  ;;  %p3596_p5 = scmp.lt.u32.totalorder %s3592_s25, %s4572_s15 }
  0x65   :  { %p3598_p6 = pnand %p3596_p5, %p3593_p4 }
  0x67   :  { %3601 = shalt.err (!%p3598_p6)
}
  0x68   :  { %s3602_s2 = scalar_lea.vmem %s149_s28, 16384  ;;  %p3607_p8 = scmp.lt.s32.totalorder %s149_s28, %s149_s28 }
  0x69   :  { %p3603_p7 = scmp.ne.s32.totalorder %s149_s28, %s3602_s2  ;;  %p3608_p9 = scmp.lt.s32.totalorder %s3602_s2, %s3602_s2 }
  0x6b   :  { %p3609_p10 = por %p3608_p9, %p3607_p8 }
  0x6d   :  { %p3610_p11 = pnand %p3609_p10, %p3603_p7 }
  0x6f   :  { %3613 = shalt.err (!%p3610_p11)
}
  0x70   :  { %s3859_s12 = smov 512   ;;  %s3860_s5 = smov 32  }
  0x71   :  { %154 = dma.hbm_to_vmem [thread:$0]  %s4572_s15, 16384, %s149_s28, [#allocation18], %s3859_s12, %s3859_s12, %s3860_s5  }
  0x72   :  { %s3861_s3 = smov [#allocation20]   ;;  %s3614_s0 = scalar_lea.hbm %s4574_s17, 16384 }
  0x73   :  { %s170_s19 = sshll.u32 %s3861_s3, 4  ;;  %p3615_p12 = scmp.ne.s32.totalorder %s4574_s17, %s3614_s0  ;;  %s171_s19 = int_to_ptr.vmem [resolvable:$true] %s170_s19 }
  0x74   :  { %p3618_p13 = scmp.lt.u32.totalorder %s3614_s0, %s4574_s17 }
  0x76   :  { %p3620_p0 = pnand %p3618_p13, %p3615_p12 }
  0x78   :  { %3623 = shalt.err (!%p3620_p0)
}
  0x79   :  { %s3624_s25 = scalar_lea.vmem %s171_s19, 16384  ;;  %p3629_p2 = scmp.lt.s32.totalorder %s171_s19, %s171_s19 }
  0x7a   :  { %p3625_p1 = scmp.ne.s32.totalorder %s171_s19, %s3624_s25  ;;  %p3630_p3 = scmp.lt.s32.totalorder %s3624_s25, %s3624_s25 }
  0x7c   :  { %p3631_p4 = por %p3630_p3, %p3629_p2 }
  0x7e   :  { %p3632_p5 = pnand %p3631_p4, %p3625_p1 }
  0x80   :  { %3635 = shalt.err (!%p3632_p5)
}
  0x81   :  { %s3862_s15 = smov 256   ;;  %s3863_s28 = smov 16  }
  0x82   :  { %176 = dma.hbm_to_vmem [thread:$0]  %s4574_s17, 16384, %s171_s19, [#allocation21], %s3862_s15, %s3862_s15, %s3863_s28  }
  0x83   :  { %s3864_s6 = smov [#allocation2]   ;;  %s3865_s2 = smov [#allocation7]  }
  0x84   :  { %s43_s4 = sshll.u32 %s3864_s6, 4  ;;  %s69_s12 = sshll.u32 %s3865_s2, 4  ;;  %s44_s4 = int_to_ptr.vmem [resolvable:$true] %s43_s4  ;;  %s70_s12 = int_to_ptr.vmem [resolvable:$true] %s69_s12 }
  0x85   :  { %s4601_s3 = sld [smem:[#allocation35_spill]] }
  0x8b   :  { %s3636_s21 = scalar_lea.hbm %s4601_s3, 32 }
  0x8c   :  { %p3637_p6 = scmp.ne.s32.totalorder %s4601_s3, %s3636_s21  ;;  %p3640_p7 = scmp.lt.u32.totalorder %s3636_s21, %s4601_s3 }
  0x8e   :  { %p3642_p8 = pnand %p3640_p7, %p3637_p6 }
  0x90   :  { %3645 = shalt.err (!%p3642_p8)
}
  0x91   :  { %s3646_s17 = scalar_lea.vmem %s44_s4, 32  ;;  %p3651_p10 = scmp.lt.s32.totalorder %s44_s4, %s44_s4 }
  0x92   :  { %p3647_p9 = scmp.ne.s32.totalorder %s44_s4, %s3646_s17  ;;  %p3652_p11 = scmp.lt.s32.totalorder %s3646_s17, %s3646_s17 }
  0x94   :  { %p3653_p12 = por %p3652_p11, %p3651_p10 }
  0x96   :  { %p3654_p13 = pnand %p3653_p12, %p3647_p9 }
  0x98   :  { %3657 = shalt.err (!%p3654_p13)
}
  0x99   :  { %46 = dma.hbm_to_vmem [thread:$0]  %s4601_s3, 32, %s44_s4, [#allocation3]  }
  0x9a   :  { %s4602_s15 = sld [smem:[#allocation39_spill]] }
  0xa0   :  { %s3658_s28 = scalar_lea.hbm %s4602_s15, 16 }
  0xa1   :  { %p3659_p0 = scmp.ne.s32.totalorder %s4602_s15, %s3658_s28  ;;  %p3662_p1 = scmp.lt.u32.totalorder %s3658_s28, %s4602_s15 }
  0xa3   :  { %p3664_p2 = pnand %p3662_p1, %p3659_p0 }
  0xa5   :  { %3667 = shalt.err (!%p3664_p2)
}
  0xa6   :  { %s3668_s22 = scalar_lea.vmem %s70_s12, 16  ;;  %s3672_s27 = scalar_lea.vmem %s70_s12, 32 }
  0xa7   :  { %p3669_p3 = scmp.ne.s32.totalorder %s70_s12, %s3668_s22  ;;  %p3673_p4 = scmp.lt.s32.totalorder %s70_s12, %s70_s12 }
  0xa8   :  { %p3674_p5 = scmp.lt.s32.totalorder %s3672_s27, %s3668_s22 }
  0xaa   :  { %p3675_p6 = por %p3674_p5, %p3673_p4 }
  0xac   :  { %p3676_p7 = pnand %p3675_p6, %p3669_p3 }
  0xae   :  { %3679 = shalt.err (!%p3676_p7)
}
  0xaf   :  { %72 = dma.hbm_to_vmem [thread:$0]  %s4602_s15, 16, %s70_s12, [#allocation6]  }
  0xb0   :  { %s3866_s21 = smov [#allocation10]   ;;  %s3867_s0 = smov [#allocation13]  }
  0xb1   :  { %s91_s8 = sshll.u32 %s3866_s21, 4  ;;  %s115_s30 = sshll.u32 %s3867_s0, 4  ;;  %s92_s8 = int_to_ptr.vmem [resolvable:$true] %s91_s8  ;;  %s116_s30 = int_to_ptr.vmem [resolvable:$true] %s115_s30 }
  0xb2   :  { %s4603_s19 = sld [smem:[#allocation41_spill]] }
  0xb8   :  { %s3680_s1 = scalar_lea.hbm %s4603_s19, 16 }
  0xb9   :  { %p3681_p8 = scmp.ne.s32.totalorder %s4603_s19, %s3680_s1  ;;  %p3684_p9 = scmp.lt.u32.totalorder %s3680_s1, %s4603_s19 }
  0xbb   :  { %p3686_p10 = pnand %p3684_p9, %p3681_p8 }
  0xbd   :  { %3689 = shalt.err (!%p3686_p10)
}
  0xbe   :  { %s3690_s12 = scalar_lea.vmem %s92_s8, 16  ;;  %s3694_s15 = scalar_lea.vmem %s92_s8, 32 }
  0xbf   :  { %p3691_p11 = scmp.ne.s32.totalorder %s92_s8, %s3690_s12  ;;  %p3695_p12 = scmp.lt.s32.totalorder %s92_s8, %s92_s8 }
  0xc0   :  { %p3696_p13 = scmp.lt.s32.totalorder %s3694_s15, %s3690_s12 }
  0xc2   :  { %p3697_p0 = por %p3696_p13, %p3695_p12 }
  0xc4   :  { %p3698_p1 = pnand %p3697_p0, %p3691_p11 }
  0xc6   :  { %3701 = shalt.err (!%p3698_p1)
}
  0xc7   :  { %94 = dma.hbm_to_vmem [thread:$0]  %s4603_s19, 16, %s92_s8, [#allocation9]  }
  0xc8   :  { %s3702_s27 = scalar_lea.hbm %s4567_s10, 16 }
  0xc9   :  { %p3703_p2 = scmp.ne.s32.totalorder %s4567_s10, %s3702_s27  ;;  %p3706_p3 = scmp.lt.u32.totalorder %s3702_s27, %s4567_s10 }
  0xcb   :  { %p3708_p4 = pnand %p3706_p3, %p3703_p2 }
  0xcd   :  { %3711 = shalt.err (!%p3708_p4)
}
  0xce   :  { %s3712_s23 = scalar_lea.vmem %s116_s30, 16  ;;  %s3716_s17 = scalar_lea.vmem %s116_s30, 32 }
  0xcf   :  { %p3713_p5 = scmp.ne.s32.totalorder %s116_s30, %s3712_s23  ;;  %p3717_p6 = scmp.lt.s32.totalorder %s116_s30, %s116_s30 }
  0xd0   :  { %p3718_p7 = scmp.lt.s32.totalorder %s3716_s17, %s3712_s23 }
  0xd2   :  { %p3719_p8 = por %p3718_p7, %p3717_p6 }
  0xd4   :  { %p3720_p9 = pnand %p3719_p8, %p3713_p5 }
  0xd6   :  { %3723 = shalt.err (!%p3720_p9)
}
  0xd7   :  { %118 = dma.hbm_to_vmem [thread:$0]  %s4567_s10, 16, %s116_s30, [#allocation12]  }
  0xd8   :  { %s3868_s1 = smov [#allocation16]   ;;  %s3869_s25 = smov [#allocation19]  }
  0xd9   :  { %s139_s24 = sshll.u32 %s3868_s1, 4  ;;  %s161_s28 = sshll.u32 %s3869_s25, 4  ;;  %s140_s24 = int_to_ptr.vmem [resolvable:$true] %s139_s24  ;;  %s162_s28 = int_to_ptr.vmem [resolvable:$true] %s161_s28 }
  0xda   :  { %s3724_s15 = scalar_lea.hbm %s4571_s14, 16 }
  0xdb   :  { %p3725_p10 = scmp.ne.s32.totalorder %s4571_s14, %s3724_s15  ;;  %p3728_p11 = scmp.lt.u32.totalorder %s3724_s15, %s4571_s14 }
  0xdd   :  { %p3730_p12 = pnand %p3728_p11, %p3725_p10 }
  0xdf   :  { %3733 = shalt.err (!%p3730_p12)
}
  0xe0   :  { %s3734_s10 = scalar_lea.vmem %s140_s24, 16  ;;  %s3738_s30 = scalar_lea.vmem %s140_s24, 32 }
  0xe1   :  { %p3735_p13 = scmp.ne.s32.totalorder %s140_s24, %s3734_s10  ;;  %p3739_p0 = scmp.lt.s32.totalorder %s140_s24, %s140_s24 }
  0xe2   :  { %p3740_p1 = scmp.lt.s32.totalorder %s3738_s30, %s3734_s10 }
  0xe4   :  { %p3741_p2 = por %p3740_p1, %p3739_p0 }
  0xe6   :  { %p3742_p3 = pnand %p3741_p2, %p3735_p13 }
  0xe8   :  { %3745 = shalt.err (!%p3742_p3)
}
  0xe9   :  { %142 = dma.hbm_to_vmem [thread:$0]  %s4571_s14, 16, %s140_s24, [#allocation15]  }
  0xea   :  { %s3746_s0 = scalar_lea.hbm %s4573_s16, 64 }
  0xeb   :  { %p3747_p4 = scmp.ne.s32.totalorder %s4573_s16, %s3746_s0  ;;  %p3750_p5 = scmp.lt.u32.totalorder %s3746_s0, %s4573_s16 }
  0xed   :  { %p3752_p6 = pnand %p3750_p5, %p3747_p4 }
  0xef   :  { %3755 = shalt.err (!%p3752_p6)
}
  0xf0   :  { %s3756_s1 = scalar_lea.vmem %s162_s28, 64  ;;  %p3761_p8 = scmp.lt.s32.totalorder %s162_s28, %s162_s28 }
  0xf1   :  { %p3757_p7 = scmp.ne.s32.totalorder %s162_s28, %s3756_s1  ;;  %p3762_p9 = scmp.lt.s32.totalorder %s3756_s1, %s3756_s1 }
  0xf3   :  { %p3763_p10 = por %p3762_p9, %p3761_p8 }
  0xf5   :  { %p3764_p11 = pnand %p3763_p10, %p3757_p7 }
  0xf7   :  { %3767 = shalt.err (!%p3764_p11)
}
  0xf8   :  { %164 = dma.hbm_to_vmem [thread:$0]  %s4573_s16, 64, %s162_s28, [#allocation18]  }
  0xf9   :  { %s3870_s25 = smov [#allocation22]   ;;  %s3871_s12 = smov [#allocation23]  }
  0xfa   :  { %s183_s26 = sshll.u32 %s3870_s25, 4  ;;  %s195_s15 = sshll.u32 %s3871_s12, 4  ;;  %s184_s26 = int_to_ptr.vmem [resolvable:$true] %s183_s26  ;;  %s196_s15 = int_to_ptr.vmem [resolvable:$true] %s195_s15 }
  0xfb   :  { %s3768_s2 = scalar_lea.hbm %s4575_s18, 32 }
  0xfc   :  { %p3769_p12 = scmp.ne.s32.totalorder %s4575_s18, %s3768_s2  ;;  %p3772_p13 = scmp.lt.u32.totalorder %s3768_s2, %s4575_s18 }
  0xfe   :  { %p3774_p0 = pnand %p3772_p13, %p3769_p12 }
 0x100   :  { %3777 = shalt.err (!%p3774_p0)
}
 0x101   :  { %s3778_s16 = scalar_lea.vmem %s184_s26, 32  ;;  %p3783_p2 = scmp.lt.s32.totalorder %s184_s26, %s184_s26 }
 0x102   :  { %p3779_p1 = scmp.ne.s32.totalorder %s184_s26, %s3778_s16  ;;  %p3784_p3 = scmp.lt.s32.totalorder %s3778_s16, %s3778_s16 }
 0x104   :  { %p3785_p4 = por %p3784_p3, %p3783_p2 }
 0x106   :  { %p3786_p5 = pnand %p3785_p4, %p3779_p1 }
 0x108   :  { %3789 = shalt.err (!%p3786_p5)
}
 0x109   :  { %186 = dma.hbm_to_vmem [thread:$0]  %s4575_s18, 32, %s184_s26, [#allocation21]  }
 0x10a   :  { %s3790_s0 = scalar_lea.hbm %s4577_s20, 16 }
 0x10b   :  { %p3791_p6 = scmp.ne.s32.totalorder %s4577_s20, %s3790_s0  ;;  %p3794_p7 = scmp.lt.u32.totalorder %s3790_s0, %s4577_s20 }
 0x10d   :  { %p3796_p8 = pnand %p3794_p7, %p3791_p6 }
 0x10f   :  { %3799 = shalt.err (!%p3796_p8)
}
 0x110   :  { %s3800_s1 = scalar_lea.vmem %s196_s15, 16  ;;  %s3804_s14 = scalar_lea.vmem %s196_s15, 32 }
 0x111   :  { %p3801_p9 = scmp.ne.s32.totalorder %s196_s15, %s3800_s1  ;;  %p3805_p10 = scmp.lt.s32.totalorder %s196_s15, %s196_s15 }
 0x112   :  { %p3806_p11 = scmp.lt.s32.totalorder %s3804_s14, %s3800_s1 }
 0x114   :  { %p3807_p12 = por %p3806_p11, %p3805_p10 }
 0x116   :  { %p3808_p13 = pnand %p3807_p12, %p3801_p9 }
 0x118   :  { %3811 = shalt.err (!%p3808_p13)
}
 0x119   :  { %198 = dma.hbm_to_vmem [thread:$0]  %s4577_s20, 16, %s196_s15, [#allocation24]  }
 0x11a   :  { %3834 = dma.done.wait [#allocation3], 32  }
 0x11b   :  { %3835 = vsyncadd [#allocation3], 4294967264 }
 0x11c   :  { %3836 = dma.done.wait [#allocation6], 784  }
 0x11d   :  { %3837 = vsyncadd [#allocation6], 4294966512 }
 0x11e   :  { %3838 = dma.done.wait [#allocation9], 1040  }
 0x11f   :  { %3839 = vsyncadd [#allocation9], 4294966256 }
 0x120   :  { %3840 = dma.done.wait [#allocation12], 32  }
 0x121   :  { %3841 = vsyncadd [#allocation12], 4294967264 }
 0x122   :  { %3842 = dma.done.wait [#allocation15], 32  }
 0x123   :  { %3843 = vsyncadd [#allocation15], 4294967264 }
 0x124   :  { %3844 = dma.done.wait [#allocation18], 16448  }
 0x125   :  { %3845 = vsyncadd [#allocation18], 4294950848 }
 0x126   :  { %3846 = dma.done.wait [#allocation21], 16416  }
 0x127   :  { %3847 = vsyncadd [#allocation21], 4294950880 }
 0x128   :  { %3848 = dma.done.wait [#allocation24], 16  }
 0x129   :  { %3849 = vsyncadd [#allocation24], 4294967280  ;;  %v3872_v0 = vmov 0.0|0.0   ;;  %vm3873_vm0 = vmmov 0   ;;  %v3874_v1 = vmov 0.0   ;;  %v246_v2 = vld [vmem:[#allocation5 + $0x10] sm:$0xff] }
 0x12a   :  { %3049 = vmatprep.subr.bf16.mxu1 %v3872_v0  ;;  %2941 = vmatprep.mubr.msk.f32.mxu1 %vm3873_vm0, %v3874_v1  ;;  %v247_v3 = vld [vmem:[#allocation5 + $0x18] sm:$0xff]  ;;  %v248_v4 = vld [vmem:[#allocation5 + $0x20] sm:$0xff]  ;;  %v249_v6 = vld [vmem:[#allocation5 + $0x28] sm:$0xff]  ;;  %s4604_s26 = sld [smem:[#allocation36_spill]]  ;;  %vm250_vm1 = vcmask 261120   ;;  %vm324_vm2 = vcmask 130048  }
 0x12b   :  { %745 = vmatprep.mubr.f32.mxu0 %v3874_v1  ;;  %v3050_v5 = vpack.c.bf16 %v247_v3, %v246_v2  ;;  %v3053_v7 = vpack.c.bf16 %v249_v6, %v248_v4  ;;  %v244_v8 = vld [vmem:[#allocation5] sm:$0xff]  ;;  %v245_v9 = vld [vmem:[#allocation5 + $0x8] sm:$0xff]  ;;  %v241_v12 = vld [vmem:[#allocation2] sm:$0x3]  ;;  %s3875_s12 = smov 64   ;;  %s4605_s6 = sld [smem:[#allocation37_spill]] }
 0x12c   :  { %v3056_v11 = vpack.c.bf16 %v245_v9, %v244_v8  ;;  %v2802_v16 = vld [vmem:[#allocation7] ss:$0 sm:$0xff]  ;;  %v451_v32 = vld [vmem:[#allocation17 + $0x88] sm:$0xff]  ;;  %v450_v34 = vld [vmem:[#allocation17 + $0x80] sm:$0xff]  ;;  %s3876_s2 = smov 96   ;;  %vm2140_vm7 = vcmask 523264  }
 0x12d   :  { %3051 = vmatpush3.bf16.msra.mxu1 %v3050_v5  ;;  %v455_v33 = vld [vmem:[#allocation17 + $0xa8] sm:$0xff]  ;;  %v454_v36 = vld [vmem:[#allocation17 + $0xa0] sm:$0xff]  ;;  %v453_v43 = vld [vmem:[#allocation17 + $0x98] sm:$0xff]  ;;  %s4606_s23 = sld [smem:[#allocation42_spill]]  ;;  %vm2311_vm11 = vcmask 58368  }
 0x12e   :  { %3052 = vmatprep.subr.bf16.mxu1 %v3872_v0  ;;  %v3058_v35 = vpack.c.bf16 %v455_v33, %v451_v32  ;;  %v459_v37 = vld [vmem:[#allocation17 + $0xc8] sm:$0xff]  ;;  %v3060_v39 = vpack.c.bf16 %v454_v36, %v450_v34  ;;  %v458_v41 = vld [vmem:[#allocation17 + $0xc0] sm:$0xff]  ;;  %v457_v44 = vld [vmem:[#allocation17 + $0xb8] sm:$0xff] }
 0x12f   :  { %v463_v38 = vld [vmem:[#allocation17 + $0xe8] sm:$0xff]  ;;  %v462_v42 = vld [vmem:[#allocation17 + $0xe0] sm:$0xff]  ;;  %v3066_v46 = vpack.c.bf16 %v457_v44, %v453_v43  ;;  %v452_v47 = vld [vmem:[#allocation17 + $0x90] sm:$0xff] }
 0x130   :  { %v4170_v10 = vld [vmem:[%s4604_s26] sm:$0x3]  ;;  %v3062_v40 = vpack.c.bf16 %v463_v38, %v459_v37  ;;  %v3064_v45 = vpack.c.bf16 %v462_v42, %v458_v41  ;;  %v456_v48 = vld [vmem:[#allocation17 + $0xb0] sm:$0xff]  ;;  %v461_v49 = vld [vmem:[#allocation17 + $0xd8] sm:$0xff] }
 0x131   :  { %3054 = vmatpush3.bf16.msra.mxu1 %v3053_v7  ;;  %v4182_v21 = vld [vmem:[%s4605_s6] sm:$0x3]  ;;  %v465_v50 = vld [vmem:[#allocation17 + $0xf8] sm:$0xff]  ;;  %v436_v54 = vld [vmem:[#allocation17 + $0x10] sm:$0xff]  ;;  %v3068_v56 = vpack.c.bf16 %v456_v48, %v452_v47 }
 0x132   :  { %3055 = vmatprep.subr.bf16.mxu1 %v3872_v0  ;;  %v437_v51 = vld [vmem:[#allocation17 + $0x18] sm:$0xff]  ;;  %v440_v55 = vld [vmem:[#allocation17 + $0x30] sm:$0xff]  ;;  %v3070_v61 = vpack.c.bf16 %v465_v50, %v461_v49  ;;  %v435_v63 = vld [vmem:[#allocation17 + $0x8] sm:$0xff] }
 0x133   :  { %v441_v52 = vld [vmem:[#allocation17 + $0x38] sm:$0xff]  ;;  %v460_v57 = vld [vmem:[#allocation17 + $0xd0] sm:$0xff]  ;;  %v3084_v58 = vpack.c.bf16 %v440_v55, %v436_v54  ;;  %v439_v3 = vld [vmem:[#allocation17 + $0x28] sm:$0xff] }
 0x134   :  { %2942 = vmatmul.mubr.msk.f32.vlgmr.msra.gmra.mrb[0].mxu1 %vm250_vm1, %v4170_v10  ;;  %v3082_v53 = vpack.c.bf16 %v441_v52, %v437_v51  ;;  %v445_v59 = vld [vmem:[#allocation17 + $0x58] sm:$0xff]  ;;  %v464_v62 = vld [vmem:[#allocation17 + $0xf0] sm:$0xff]  ;;  %v442_v32 = vld [vmem:[#allocation17 + $0x40] sm:$0xff] }
 0x135   :  { %3057 = vmatpush3.bf16.msra.mxu1 %v3056_v11  ;;  %2948 = vmatprep.mubr.msk.f32.mxu1 %vm3873_vm0, %v3874_v1  ;;  %v449_v2 = vld [vmem:[#allocation17 + $0x78] sm:$0xff]  ;;  %v444_v5 = vld [vmem:[#allocation17 + $0x50] sm:$0xff]  ;;  %v3072_v11 = vpack.c.bf16 %v464_v62, %v460_v57  ;;  %v446_v33 = vld [vmem:[#allocation17 + $0x60] sm:$0xff] }
 0x136   :  { %3059 = vmatprep.subr.bf16.mxu1 %v3058_v35  ;;  %3083 = vmatprep.subr.bf16.mxu0 %v3082_v53  ;;  %v3086_v4 = vpack.c.bf16 %v449_v2, %v445_v59  ;;  %v448_v6 = vld [vmem:[#allocation17 + $0x70] sm:$0xff]  ;;  %v755_v8 = vld [vmem:[#allocation17 + $0x118] sm:$0xff]  ;;  %v753_v34 = vld [vmem:[#allocation17 + $0x108] sm:$0xff]  ;;  %v3080_v38 = vpack.c.bf16 %v446_v33, %v442_v32 }
 0x137   :  { %3085 = vmatpush1.bf16.msra.mxu0 %v3084_v58  ;;  %v3088_v7 = vpack.c.bf16 %v448_v6, %v444_v5  ;;  %v759_v9 = vld [vmem:[#allocation17 + $0x138] sm:$0xff]  ;;  %v757_v35 = vld [vmem:[#allocation17 + $0x128] sm:$0xff]  ;;  %v756_v41 = vld [vmem:[#allocation17 + $0x120] sm:$0xff] }
 0x138   :  { %2949 = vmatmul.mubr.msk.f32.vlgmr.msra.gmra.mrb[2].mxu1 %vm324_vm2, %v241_v12  ;;  %v434_v12 = vld [vmem:[#allocation17] sm:$0xff]  ;;  %3087 = vmatprep.subr.bf16.mxu0 %v3086_v4  ;;  %v761_v42 = vld [vmem:[#allocation17 + $0x148] sm:$0xff]  ;;  %v921_v57 = vld [vmem:[#allocation17 + $0x190] sm:$0xff] }
 0x139   :  { %532 = vmatprep.mubr.f32.mxu1 %v3874_v1  ;;  %3061 = vmatpush1.bf16.msra.mxu1 %v3060_v39  ;;  %v3090_v39 = vpack.c.bf16 %v757_v35, %v753_v34  ;;  %v765_v43 = vld [vmem:[#allocation17 + $0x168] sm:$0xff]  ;;  %v4214_v53 = vld [vmem:[%s4605_s6 + $0x2] sm:$0x3]  ;;  %v925_v58 = vld [vmem:[#allocation17 + $0x1b0] sm:$0xff] }
 0x13a   :  { %3063 = vmatprep.subr.bf16.mxu1 %v3062_v40  ;;  %v752_v40 = vld [vmem:[#allocation17 + $0x100] sm:$0xff]  ;;  %v920_v47 = vld [vmem:[#allocation17 + $0x188] sm:$0xff]  ;;  %v929_v6 = vld [vmem:[#allocation17 + $0x1d0] sm:$0xff] }
 0x13b   :  { %3089 = vmatpush1.bf16.msra.mxu0 %v3088_v7  ;;  %v3092_v44 = vpack.c.bf16 %v756_v41, %v752_v40  ;;  %v924_v48 = vld [vmem:[#allocation17 + $0x1a8] sm:$0xff]  ;;  %v919_v55 = vld [vmem:[#allocation17 + $0x180] sm:$0xff]  ;;  %v933_v7 = vld [vmem:[#allocation17 + $0x1f0] sm:$0xff] }
 0x13c   :  { %v3106_v50 = vpack.c.bf16 %v924_v48, %v920_v47  ;;  %v928_v59 = vld [vmem:[#allocation17 + $0x1c8] sm:$0xff]  ;;  %v927_v2 = vld [vmem:[#allocation17 + $0x1c0] sm:$0xff] }
 0x13d   :  { %3065 = vmatpush1.bf16.msra.mxu1 %v3064_v45  ;;  %v3094_v45 = vpack.c.bf16 %v765_v43, %v761_v42  ;;  %v931_v5 = vld [vmem:[#allocation17 + $0x1e0] sm:$0xff] }
 0x13e   :  { %3067 = vmatprep.subr.bf16.mxu1 %v3066_v46  ;;  %2807 = vmatmul.mubr.msk.f32.vlgmr.msra.gmra.mrb[0].mxu0 %vm250_vm1, %v4170_v10  ;;  %v760_v46 = vld [vmem:[#allocation17 + $0x140] sm:$0xff] }
 0x13f   :  { %908 = vmatprep.mubr.f32.mxu0 %v3874_v1  ;;  %v1277_v47 = vld [vmem:[#allocation17 + $0x200] sm:$0xff] }
 0x140   :  { %2804 = vmatmul.mubr.msk.f32.vlgmr.msra.gmra.mrb[4].mxu1 %vm250_vm1, %v4182_v21 }
 0x141   :  { %3069 = vmatpush1.bf16.msra.mxu1 %v3068_v56  ;;  %603 = vmatprep.mubr.f32.mxu1 %v3874_v1  ;;  %v923_v56 = vld [vmem:[#allocation17 + $0x1a0] sm:$0xff] }
 0x142   :  { %3071 = vmatprep.subr.bf16.mxu1 %v3070_v61  ;;  %v934_v61 = vld [vmem:[#allocation17 + $0x1f8] sm:$0xff]  ;;  %v3108_v62 = vpack.c.bf16 %v923_v56, %v919_v55  ;;  %v1279_v56 = vld [vmem:[#allocation17 + $0x210] sm:$0xff] }
 0x145   :  { %3073 = vmatpush1.bf16.msra.mxu1 %v3072_v11  ;;  %v3120_v11 = vpack.c.bf16 %v933_v7, %v929_v6  ;;  %v1291_v6 = vld [vmem:[#allocation17 + $0x270] sm:$0xff]  ;;  %v1440_v7 = vld [vmem:[#allocation17 + $0x288] sm:$0xff] }
 0x148   :  { %2805 = vmatmul.mubr.msk.f32.vlgmr.msra.gmra.mrb[6].mxu1 %vm250_vm1, %v4182_v21 }
 0x149   :  { %674 = vmatprep.mubr.f32.mxu1 %v3874_v1 }
 0x207   :  { %v320_v13 = vpop.f32.mrb[0].mxu1 }
 0x208   :  { %v2943_v14 = vpop.f32.mrb[1].mxu1 }
 0x209   :  { %v754_v14 = vld [vmem:[#allocation17 + $0x110] sm:$0xff] }
 0x20b   :  { %v394_v15 = vpop.f32.mrb[2].mxu1 }
 0x20c   :  { %v395_v17 = vadd.f32 %v394_v15, %v320_v13  ;;  %v2950_v18 = vpop.f32.mrb[3].mxu1  ;;  %v3098_v13 = vpack.c.bf16 %v759_v9, %v755_v8  ;;  %v3074_v15 = vpack.c.bf16 %v439_v3, %v435_v63  ;;  %v3116_v63 = vpack.c.bf16 %v925_v58, %v921_v57  ;;  %v1283_v57 = vld [vmem:[#allocation17 + $0x230] sm:$0xff]  ;;  %v1286_v58 = vld [vmem:[#allocation17 + $0x248] sm:$0xff] }
 0x20d   :  { %v758_v18 = vld [vmem:[#allocation17 + $0x130] sm:$0xff]  ;;  %v3112_v9 = vpack.c.bf16 %v931_v5, %v927_v2  ;;  %v1288_v2 = vld [vmem:[#allocation17 + $0x258] sm:$0xff] }
 0x20e   :  { %v405_v19 = vadd.f32 %v2802_v16, %v395_v17  ;;  %v438_v16 = vld [vmem:[#allocation17 + $0x20] sm:$0xff]  ;;  %v443_v17 = vld [vmem:[#allocation17 + $0x48] sm:$0xff]  ;;  %3099 = vmatprep.subr.bf16.mxu0 %v3098_v13  ;;  %3075 = vmatprep.subr.bf16.mxu1 %v3074_v15 }
 0x20f   :  { %v1095_v13 = vld [vmem:[#allocation8 + $0x28] sm:$0xff] }
 0x210   :  { %3464 = vtanh.f32 %v405_v19  ;;  %v2803_v22 = vmul.f32 -1.442695, %v405_v19  ;;  %v447_v19 = vld [vmem:[#allocation17 + $0x68] sm:$0xff]  ;;  %v1091_v15 = vld [vmem:[#allocation8 + $0x8] sm:$0xff] }
 0x212   :  { %3466 = vpow2.f32 %v2803_v22  ;;  %v763_v22 = vld [vmem:[#allocation17 + $0x158] sm:$0xff] }
 0x21a   :  { %v3465_v20 = vpop.eup %3464 }
 0x21b   :  { %419 = vrot.lane.b32.xlu0 %v3465_v20, %s3875_s12  ;;  %v3100_v20 = vpack.c.bf16 %v758_v18, %v754_v14  ;;  %v1090_v14 = vld [vmem:[#allocation8] sm:$0xff]  ;;  %v1096_v18 = vld [vmem:[#allocation8 + $0x30] sm:$0xff] }
 0x21c   :  { %v3467_v23 = vpop.eup %3466 }
 0x21d   :  { %v409_v24 = vadd.f32 1.0, %v3467_v23  ;;  %v767_v23 = vld [vmem:[#allocation17 + $0x178] sm:$0xff]  ;;  %3101 = vmatpush1.bf16.msra.mxu0 %v3100_v20  ;;  %v1092_v20 = vld [vmem:[#allocation8 + $0x10] sm:$0xff] }
 0x21f   :  { %414 = vrot.lane.b32.xlu0 %v4182_v21, %s3860_s5  ;;  %3468 = vrcp.f32 %v409_v24  ;;  %v3102_v24 = vpack.c.bf16 %v767_v23, %v763_v22  ;;  %v764_v21 = vld [vmem:[#allocation17 + $0x160] sm:$0xff]  ;;  %v1093_v22 = vld [vmem:[#allocation8 + $0x18] sm:$0xff] }
 0x220   :  { %v3096_v49 = vpack.c.bf16 %v764_v21, %v760_v46  ;;  %v1278_v46 = vld [vmem:[#allocation17 + $0x208] sm:$0xff] }
 0x221   :  { %3103 = vmatprep.subr.bf16.mxu0 %v3102_v24  ;;  %v1282_v21 = vld [vmem:[#allocation17 + $0x228] sm:$0xff] }
 0x222   :  { %v3134_v48 = vpack.c.bf16 %v1282_v21, %v1278_v46  ;;  %v1605_v46 = vld [vmem:[#allocation17 + $0x310] sm:$0xff] }
 0x229   :  { %v4186_v25 = vpop.eup %3468 }
 0x28d   :  { %v420_v26 = vpop.permute.xlu0 %419 }
 0x28e   :  { %v422_v27 = vmul.f32 %v4186_v25, %v420_v26  ;;  %v762_v26 = vld [vmem:[#allocation17 + $0x150] sm:$0xff] }
 0x290   :  { %424 = vrot.lane.b32.xlu1 %v422_v27, %s3860_s5  ;;  %v766_v27 = vld [vmem:[#allocation17 + $0x170] sm:$0xff] }
 0x291   :  { %v415_v28 = vpop.permute.xlu0 %414  ;;  %v3104_v36 = vpack.c.bf16 %v766_v27, %v762_v26  ;;  %v3132_v26 = vpack.c.bf16 %v1093_v22, %v1092_v20  ;;  %v4239_v27 = vld [vmem:[%s4604_s26 + $0x2] sm:$0x3]  ;;  %v1448_v20 = vld [vmem:[#allocation17 + $0x2c8] sm:$0xff] }
 0x292   :  { %v417_v29 = vmul.f32 %v4186_v25, %v415_v28  ;;  %v3076_v28 = vpack.c.bf16 %v438_v16, %v434_v12  ;;  %v1094_v12 = vld [vmem:[#allocation8 + $0x20] sm:$0xff]  ;;  %v1452_v22 = vld [vmem:[#allocation17 + $0x2e8] sm:$0xff] }
 0x293   :  { %3105 = vmatpush1.bf16.msra.mxu0 %v3104_v36  ;;  %v3123_v16 = vpack.c.bf16 %v1095_v13, %v1094_v12  ;;  %v1439_v12 = vld [vmem:[#allocation17 + $0x280] sm:$0xff] }
 0x294   :  { %3077 = vmatpush1.bf16.msra.mxu1 %v3076_v28  ;;  %v1443_v13 = vld [vmem:[#allocation17 + $0x2a0] sm:$0xff] }
 0x302   :  { %v425_v30 = vpop.permute.xlu1 %424 }
 0x303   :  { %v4191_v31 = vadd.f32 %v425_v30, %v417_v29  ;;  %v922_v29 = vld [vmem:[#allocation17 + $0x198] sm:$0xff]  ;;  %v3078_v30 = vpack.c.bf16 %v447_v19, %v443_v17  ;;  %v3129_v17 = vpack.c.bf16 %v1091_v15, %v1090_v14  ;;  %v1097_v19 = vld [vmem:[#allocation8 + $0x38] sm:$0xff] }
 0x304   :  { %v3126_v24 = vpack.c.bf16 %v1097_v19, %v1096_v18  ;;  %v1442_v14 = vld [vmem:[#allocation17 + $0x298] sm:$0xff]  ;;  %v3152_v18 = vpack.c.bf16 %v1443_v13, %v1439_v12  ;;  %v1783_v12 = vld [vmem:[#allocation17 + $0x3e8] sm:$0xff] }
 0x305   :  { %3470 = vtanh.f32 %v4191_v31  ;;  %3079 = vmatprep.subr.bf16.mxu1 %v3078_v30  ;;  %v2816_v30 = vld [vmem:[#allocation10] ss:$0 sm:$0xff]  ;;  %v1446_v15 = vld [vmem:[#allocation17 + $0x2b8] sm:$0xff] }
 0x306   :  { %3081 = vmatpush1.bf16.msra.mxu1 %v3080_v38  ;;  %v3158_v19 = vpack.c.bf16 %v1446_v15, %v1442_v14  ;;  %v1781_v13 = vld [vmem:[#allocation17 + $0x3d8] sm:$0xff] }
 0x307   :  { %3091 = vmatprep.subr.bf16.mxu1 %v3090_v39  ;;  %v1785_v14 = vld [vmem:[#allocation17 + $0x3f8] sm:$0xff] }
 0x309   :  { %2806 = vmatmul.mubr.msk.f32.vlgmr.msra.gmra.mrb[4].mxu1 %vm250_vm1, %v4170_v10  ;;  %v4218_v10 = vpop.f32.mrb[6].mxu1 }
 0x30a   :  { %3093 = vmatpush1.bf16.msra.mxu1 %v3092_v44  ;;  %837 = vmatprep.mubr.f32.mxu1 %v3874_v1  ;;  %v4220_v54 = vpop.f32.mrb[7].mxu1 }
 0x30b   :  { %3095 = vmatprep.subr.bf16.mxu1 %v3094_v45 }
 0x30e   :  { %3097 = vmatpush1.bf16.msra.mxu1 %v3096_v49  ;;  %v1281_v49 = vld [vmem:[#allocation17 + $0x220] sm:$0xff] }
 0x30f   :  { %v3471_v60 = vpop.eup %3470  ;;  %3107 = vmatprep.subr.bf16.mxu1 %v3106_v50  ;;  %v1280_v50 = vld [vmem:[#allocation17 + $0x218] sm:$0xff] }
 0x310   :  { %430 = vrot.lane.b32.xlu1 %v3471_v60, %s3875_s12  ;;  %v930_v60 = vld [vmem:[#allocation17 + $0x1d8] sm:$0xff] }
 0x311   :  { %v3118_v4 = vpack.c.bf16 %v934_v61, %v930_v60  ;;  %v1285_v60 = vld [vmem:[#allocation17 + $0x240] sm:$0xff] }
 0x312   :  { %v1289_v61 = vld [vmem:[#allocation17 + $0x260] sm:$0xff] }
 0x314   :  { %936 = vrot.lane.b32.xlu1 %v4191_v31, %s3876_s2  ;;  %v926_v31 = vld [vmem:[#allocation17 + $0x1b8] sm:$0xff] }
 0x315   :  { %v3114_v37 = vpack.c.bf16 %v926_v31, %v922_v29 }
 0x317   :  { %3115 = vmatprep.subr.bf16.mxu0 %v3114_v37 }
 0x318   :  { %1257 = vrot.lane.b32.xlu1 %v4214_v53, %s3860_s5 }
 0x382   :  { %v431_v51 = vpop.permute.xlu1 %430 }
 0x383   :  { %v433_v52 = vmul.f32 %v4186_v25, %v431_v51  ;;  %v932_v25 = vld [vmem:[#allocation17 + $0x1e8] sm:$0xff]  ;;  %v1284_v51 = vld [vmem:[#allocation17 + $0x238] sm:$0xff] }
 0x384   :  { %v3110_v3 = vpack.c.bf16 %v932_v25, %v928_v59  ;;  %v3142_v55 = vpack.c.bf16 %v1284_v51, %v1280_v50  ;;  %v3144_v59 = vpack.c.bf16 %v1283_v57, %v1279_v56  ;;  %v1290_v25 = vld [vmem:[#allocation17 + $0x268] sm:$0xff]  ;;  %v1618_v50 = vld [vmem:[#allocation17 + $0x378] sm:$0xff]  ;;  %v1611_v56 = vld [vmem:[#allocation17 + $0x340] sm:$0xff] }
 0x385   :  { %769 = vrot.lane.b32.xlu0 %v433_v52, %s3860_s5  ;;  %v3136_v52 = vpack.c.bf16 %v1281_v49, %v1277_v47  ;;  %v1609_v47 = vld [vmem:[#allocation17 + $0x330] sm:$0xff]  ;;  %v1616_v49 = vld [vmem:[#allocation17 + $0x368] sm:$0xff]  ;;  %v1615_v57 = vld [vmem:[#allocation17 + $0x360] sm:$0xff] }
 0x386   :  { %v937_v23 = vpop.permute.xlu1 %936 }
 0x38a   :  { %v1258_v42 = vpop.permute.xlu1 %1257 }
 0x3f7   :  { %v770_v8 = vpop.permute.xlu0 %769 }
 0x3f8   :  { %2808 = vmatmul.mubr.msk.f32.vlgmr.msra.gmra.mrb[4].mxu1 %vm250_vm1, %v770_v8  ;;  %2809 = vmatmul.mubr.msk.f32.vlgmr.msra.gmra.mrb[0].mxu0 %vm250_vm1, %v770_v8 }
 0x3f9   :  { %3109 = vmatpush1.bf16.msra.mxu1 %v3108_v62  ;;  %3117 = vmatpush1.bf16.msra.mxu0 %v3116_v63  ;;  %v3138_v62 = vpack.c.bf16 %v1290_v25, %v1286_v58  ;;  %v3140_v63 = vpack.c.bf16 %v1289_v61, %v1285_v60  ;;  %v1771_v25 = vld [vmem:[#allocation17 + $0x388] sm:$0xff]  ;;  %v3172_v61 = vpack.c.bf16 %v1615_v57, %v1611_v56 }
 0x3fa   :  { %3111 = vmatprep.subr.bf16.mxu1 %v3110_v3  ;;  %3119 = vmatprep.subr.bf16.mxu0 %v3118_v4  ;;  %v1292_v3 = vld [vmem:[#allocation17 + $0x278] sm:$0xff]  ;;  %v1287_v4 = vld [vmem:[#allocation17 + $0x250] sm:$0xff]  ;;  %v1775_v60 = vld [vmem:[#allocation17 + $0x3a8] sm:$0xff] }
 0x3fb   :  { %1004 = vmatprep.mubr.f32.mxu1 %v3874_v1  ;;  %1075 = vmatprep.mubr.f32.mxu0 %v3874_v1  ;;  %v3146_v5 = vpack.c.bf16 %v1292_v3, %v1288_v2  ;;  %v1773_v2 = vld [vmem:[#allocation17 + $0x398] sm:$0xff]  ;;  %v2033_v56 = vld [vmem:[%s4566_s9 + $0x40] sm:$0xff]  ;;  %v2034_v57 = vld [vmem:[%s4566_s9 + $0x48] sm:$0xff] }
 0x3fc   :  { %v1777_v3 = vld [vmem:[#allocation17 + $0x3b8] sm:$0xff] }
 0x3fd   :  { %3113 = vmatpush1.bf16.msra.mxu1 %v3112_v9  ;;  %3121 = vmatpush1.bf16.msra.mxu0 %v3120_v11  ;;  %v3148_v9 = vpack.c.bf16 %v1291_v6, %v1287_v4  ;;  %v3190_v4 = vpack.c.bf16 %v1777_v3, %v1773_v2  ;;  %v1770_v6 = vld [vmem:[#allocation17 + $0x380] sm:$0xff] }
 0x3fe   :  { %3122 = vmatprep.subr.bf16.mxu1 %v3872_v0  ;;  %3128 = vmatprep.subr.bf16.mxu0 %v3872_v0  ;;  %v2040_v2 = vld [vmem:[%s4566_s9 + $0x78] sm:$0xff] }
 0x400   :  { %2810 = vmatmul.mubr.msk.f32.vlgmr.msra.gmra.mrb[4].mxu1 %vm250_vm1, %v937_v23  ;;  %2811 = vmatmul.mubr.msk.f32.vlgmr.msra.gmra.mrb[0].mxu0 %vm250_vm1, %v937_v23  ;;  %v1447_v23 = vld [vmem:[#allocation17 + $0x2c0] sm:$0xff] }
 0x401   :  { %3124 = vmatpush3.bf16.msra.mxu1 %v3123_v16  ;;  %3130 = vmatpush3.bf16.msra.mxu0 %v3129_v17  ;;  %v1441_v16 = vld [vmem:[#allocation17 + $0x290] sm:$0xff] }
 0x402   :  { %3125 = vmatprep.subr.bf16.mxu1 %v3872_v0  ;;  %3131 = vmatprep.subr.bf16.mxu0 %v3872_v0  ;;  %v1445_v17 = vld [vmem:[#allocation17 + $0x2b0] sm:$0xff] }
 0x403   :  { %2959 = vmatprep.mubr.msk.f32.mxu1 %vm3873_vm0, %v3874_v1  ;;  %2970 = vmatprep.mubr.msk.f32.mxu0 %vm3873_vm0, %v3874_v1 }
 0x405   :  { %3127 = vmatpush3.bf16.msra.mxu1 %v3126_v24  ;;  %3133 = vmatpush3.bf16.msra.mxu0 %v3132_v26  ;;  %v3160_v26 = vpack.c.bf16 %v1445_v17, %v1441_v16  ;;  %v1778_v17 = vld [vmem:[#allocation17 + $0x3c0] sm:$0xff] }
 0x406   :  { %3135 = vmatprep.subr.bf16.mxu1 %v3134_v48  ;;  %3143 = vmatprep.subr.bf16.mxu0 %v3142_v55  ;;  %v1612_v48 = vld [vmem:[#allocation17 + $0x348] sm:$0xff] }
 0x407   :  { %v3170_v55 = vpack.c.bf16 %v1616_v49, %v1612_v48  ;;  %v2029_v49 = vld [vmem:[%s4566_s9 + $0x20] sm:$0xff] }
 0x408   :  { %2960 = vmatmul.mubr.msk.f32.vlgmr.msra.gmra.mrb[8].mxu1 %vm250_vm1, %v4239_v27  ;;  %2971 = vmatmul.mubr.msk.f32.vlgmr.msra.gmra.mrb[2].mxu0 %vm250_vm1, %v770_v8  ;;  %v1444_v8 = vld [vmem:[#allocation17 + $0x2a8] sm:$0xff] }
 0x409   :  { %1357 = vmatprep.mubr.f32.mxu1 %v3874_v1  ;;  %1428 = vmatprep.mubr.f32.mxu0 %v3874_v1  ;;  %v3150_v11 = vpack.c.bf16 %v1444_v8, %v1440_v7  ;;  %v1774_v7 = vld [vmem:[#allocation17 + $0x3a0] sm:$0xff]  ;;  %v1772_v8 = vld [vmem:[#allocation17 + $0x390] sm:$0xff] }
 0x40a   :  { %3137 = vmatpush1.bf16.msra.mxu1 %v3136_v52  ;;  %3145 = vmatpush1.bf16.msra.mxu0 %v3144_v59  ;;  %v3176_v52 = vpack.c.bf16 %v1609_v47, %v1605_v46  ;;  %v1617_v59 = vld [vmem:[#allocation17 + $0x370] sm:$0xff]  ;;  %v3184_v15 = vpack.c.bf16 %v1774_v7, %v1770_v6 }
 0x40b   :  { %3139 = vmatprep.subr.bf16.mxu1 %v3138_v62  ;;  %3147 = vmatprep.subr.bf16.mxu0 %v3146_v5 }
 0x40e   :  { %3141 = vmatpush1.bf16.msra.mxu1 %v3140_v63  ;;  %3149 = vmatpush1.bf16.msra.mxu0 %v3148_v9  ;;  %v3182_v63 = vpack.c.bf16 %v1775_v60, %v1771_v25  ;;  %v1776_v9 = vld [vmem:[#allocation17 + $0x3b0] sm:$0xff]  ;;  %v2037_v60 = vld [vmem:[%s4566_s9 + $0x60] sm:$0xff] }
 0x40f   :  { %3151 = vmatprep.subr.bf16.mxu1 %v3150_v11  ;;  %3159 = vmatprep.subr.bf16.mxu0 %v3158_v19  ;;  %v1779_v11 = vld [vmem:[#allocation17 + $0x3c8] sm:$0xff]  ;;  %v3192_v16 = vpack.c.bf16 %v1776_v9, %v1772_v8  ;;  %v1782_v19 = vld [vmem:[#allocation17 + $0x3e0] sm:$0xff] }
 0x411   :  { %2818 = vmatmul.mubr.msk.f32.vlgmr.msra.gmra.mrb[4].mxu1 %vm250_vm1, %v4239_v27  ;;  %2819 = vmatmul.mubr.msk.f32.vlgmr.msra.gmra.mrb[0].mxu0 %vm250_vm1, %v4239_v27  ;;  %v1614_v27 = vld [vmem:[#allocation17 + $0x358] sm:$0xff] }
 0x412   :  { %3153 = vmatpush1.bf16.msra.mxu1 %v3152_v18  ;;  %3161 = vmatpush1.bf16.msra.mxu0 %v3160_v26  ;;  %v3178_v58 = vpack.c.bf16 %v1618_v50, %v1614_v27  ;;  %v3186_v18 = vpack.c.bf16 %v1783_v12, %v1779_v11  ;;  %v2030_v27 = vld [vmem:[%s4566_s9 + $0x28] sm:$0xff] }
 0x413   :  { %1521 = vmatprep.mubr.f32.mxu1 %v3874_v1  ;;  %1592 = vmatprep.mubr.f32.mxu0 %v3874_v1  ;;  %v3211_v50 = vpack.c.bf16 %v2030_v27, %v2029_v49  ;;  %v2375_v49 = vld [vmem:[#allocation20 + $0x40] sm:$0xff]  ;;  %v2377_v27 = vld [vmem:[#allocation20 + $0x50] sm:$0xff] }
 0x4db   :  { %v1167_v28 = vpop.f32.mrb[8].mxu1  ;;  %v1237_v29 = vpop.f32.mrb[2].mxu0 }
 0x4dc   :  { %v1238_v32 = vadd.f32 %v1237_v29, %v1167_v28  ;;  %v2961_v33 = vpop.f32.mrb[9].mxu1  ;;  %v2972_v31 = vpop.f32.mrb[3].mxu0  ;;  %v3154_v28 = vpack.c.bf16 %v1452_v22, %v1448_v20  ;;  %v1451_v29 = vld [vmem:[#allocation17 + $0x2e0] sm:$0xff]  ;;  %v3194_v20 = vpack.c.bf16 %v1785_v14, %v1781_v13  ;;  %v1780_v22 = vld [vmem:[#allocation17 + $0x3d0] sm:$0xff] }
 0x4dd   :  { %v1449_v31 = vld [vmem:[#allocation17 + $0x2d0] sm:$0xff] }
 0x4de   :  { %v1248_v34 = vadd.f32 %v2816_v30, %v1238_v32  ;;  %v1450_v30 = vld [vmem:[#allocation17 + $0x2d8] sm:$0xff]  ;;  %3155 = vmatprep.subr.bf16.mxu1 %v3154_v28  ;;  %v1937_v28 = vld [vmem:[%s4564_s7] sm:$0xff] }
 0x4df   :  { %v1454_v32 = vld [vmem:[#allocation17 + $0x2f8] sm:$0xff] }
 0x4e0   :  { %3472 = vtanh.f32 %v1248_v34  ;;  %v2817_v36 = vmul.f32 -1.442695, %v1248_v34  ;;  %v3162_v33 = vpack.c.bf16 %v1454_v32, %v1450_v30  ;;  %v1453_v34 = vld [vmem:[#allocation17 + $0x2f0] sm:$0xff]  ;;  %v2025_v30 = vld [vmem:[%s4566_s9] sm:$0xff] }
 0x4e1   :  { %v2026_v32 = vld [vmem:[%s4566_s9 + $0x8] sm:$0xff] }
 0x4e2   :  { %3474 = vpow2.f32 %v2817_v36  ;;  %v1608_v36 = vld [vmem:[#allocation17 + $0x328] sm:$0xff]  ;;  %3163 = vmatprep.subr.bf16.mxu0 %v3162_v33 }
 0x4ea   :  { %v3473_v35 = vpop.eup %3472 }
 0x4eb   :  { %1262 = vrot.lane.b32.xlu0 %v3473_v35, %s3875_s12  ;;  %v1604_v35 = vld [vmem:[#allocation17 + $0x308] sm:$0xff] }
 0x4ec   :  { %v3475_v37 = vpop.eup %3474 }
 0x4ed   :  { %v1252_v38 = vadd.f32 1.0, %v3475_v37  ;;  %v3156_v37 = vpack.c.bf16 %v1451_v29, %v1447_v23  ;;  %v1784_v23 = vld [vmem:[#allocation17 + $0x3f0] sm:$0xff] }
 0x4ee   :  { %v3196_v26 = vpack.c.bf16 %v1784_v23, %v1780_v22  ;;  %v1938_v29 = vld [vmem:[%s4564_s7 + $0x8] sm:$0xff] }
 0x4ef   :  { %3476 = vrcp.f32 %v1252_v38  ;;  %v1606_v38 = vld [vmem:[#allocation17 + $0x318] sm:$0xff]  ;;  %3157 = vmatpush1.bf16.msra.mxu1 %v3156_v37  ;;  %v3199_v33 = vpack.c.bf16 %v1938_v29, %v1937_v28 }
 0x4f2   :  { %2820 = vmatmul.mubr.msk.f32.vlgmr.msra.gmra.mrb[4].mxu1 %vm250_vm1, %v4214_v53 }
 0x4f3   :  { %1688 = vmatprep.mubr.f32.mxu1 %v3874_v1 }
 0x4f9   :  { %v4247_v39 = vpop.eup %3476 }
 0x4fa   :  { %v1260_v43 = vmul.f32 %v4247_v39, %v1258_v42  ;;  %v3166_v42 = vpack.c.bf16 %v1608_v36, %v1604_v35  ;;  %v3205_v35 = vpack.c.bf16 %v2026_v32, %v2025_v30  ;;  %v2367_v30 = vld [vmem:[#allocation20] sm:$0xff]  ;;  %v2369_v32 = vld [vmem:[#allocation20 + $0x10] sm:$0xff] }
 0x4fc   :  { %3167 = vmatprep.subr.bf16.mxu1 %v3166_v42  ;;  %v2027_v42 = vld [vmem:[%s4566_s9 + $0x10] sm:$0xff] }
 0x55d   :  { %v1263_v40 = vpop.permute.xlu0 %1262 }
 0x55e   :  { %v1265_v41 = vmul.f32 %v4247_v39, %v1263_v40  ;;  %v1610_v40 = vld [vmem:[#allocation17 + $0x338] sm:$0xff] }
 0x55f   :  { %v3174_v21 = vpack.c.bf16 %v1610_v40, %v1606_v38  ;;  %v2315_v38 = vlaneseq }
 0x560   :  { %1267 = vrot.lane.b32.xlu0 %v1265_v41, %s3860_s5  ;;  %v3164_v41 = vpack.c.bf16 %v1453_v34, %v1449_v31  ;;  %v1939_v31 = vld [vmem:[%s4564_s7 + $0x10] sm:$0xff]  ;;  %v1940_v34 = vld [vmem:[%s4564_s7 + $0x18] sm:$0xff] }
 0x561   :  { %v3202_v37 = vpack.c.bf16 %v1940_v34, %v1939_v31  ;;  %v4308_v40 = vshrl.u32 %v2315_v38, 7  ;;  %v2374_v31 = vld [vmem:[#allocation20 + $0x38] sm:$0xff] }
 0x562   :  { %3165 = vmatpush1.bf16.msra.mxu0 %v3164_v41 }
 0x563   :  { %3175 = vmatprep.subr.bf16.mxu0 %v3174_v21  ;;  %v2325_v41 = vsub.s32 2, %v4308_v40  ;;  %v2329_v46 = vsub.s32 3, %v4308_v40  ;;  %v2321_v6 = vsub.s32 1, %v4308_v40 }
 0x565   :  { %2821 = vmatmul.mubr.msk.f32.vlgmr.msra.gmra.mrb[0].mxu0 %vm250_vm1, %v4214_v53 }
 0x566   :  { %3177 = vmatpush1.bf16.msra.mxu0 %v3176_v52  ;;  %1759 = vmatprep.mubr.f32.mxu0 %v3874_v1  ;;  %v2032_v52 = vld [vmem:[%s4566_s9 + $0x38] sm:$0xff] }
 0x567   :  { %3179 = vmatprep.subr.bf16.mxu0 %v3178_v58  ;;  %v2035_v58 = vld [vmem:[%s4566_s9 + $0x50] sm:$0xff] }
 0x5d2   :  { %v1268_v44 = vpop.permute.xlu0 %1267 }
 0x5d3   :  { %v4252_v45 = vadd.f32 %v1268_v44, %v1260_v43  ;;  %v1603_v43 = vld [vmem:[#allocation17 + $0x300] sm:$0xff] }
 0x5d4   :  { %v1607_v44 = vld [vmem:[#allocation17 + $0x320] sm:$0xff] }
 0x5d5   :  { %3478 = vtanh.f32 %v4252_v45  ;;  %v3168_v51 = vpack.c.bf16 %v1607_v44, %v1603_v43  ;;  %v2028_v43 = vld [vmem:[%s4566_s9 + $0x18] sm:$0xff] }
 0x5d6   :  { %v4317_v44 = vld [vmem:[#allocation19] sm:$0xf]  ;;  %v3208_v21 = vpack.c.bf16 %v2028_v43, %v2027_v42  ;;  %v2373_v42 = vld [vmem:[#allocation20 + $0x30] sm:$0xff] }
 0x5d7   :  { %3169 = vmatpush1.bf16.msra.mxu1 %v3168_v51  ;;  %v2326_v47 = vrot.slane %v4317_v44, %v2325_v41  ;;  %v2330_v48 = vrot.slane %v4317_v44, %v2329_v46  ;;  %v2031_v51 = vld [vmem:[%s4566_s9 + $0x30] sm:$0xff]  ;;  %v2322_v7 = vrot.slane %v4317_v44, %v2321_v6  ;;  %v2371_v41 = vld [vmem:[#allocation20 + $0x20] sm:$0xff] }
 0x5d8   :  { %3171 = vmatprep.subr.bf16.mxu1 %v3170_v55  ;;  %v3214_v55 = vpack.c.bf16 %v2032_v52, %v2031_v51  ;;  %v2376_v46 = vld [vmem:[#allocation20 + $0x48] sm:$0xff]  ;;  %v2382_v51 = vld [vmem:[#allocation20 + $0x78] sm:$0xff]  ;;  %v3256_v52 = vpack.c.bf16 %v2377_v27, %v2375_v49  ;;  %v2411_v49 = vld [vmem:[#allocation20 + $0x160] sm:$0xff] }
 0x5d9   :  { %v2413_v27 = vld [vmem:[#allocation20 + $0x170] sm:$0xff] }
 0x5db   :  { %3173 = vmatpush1.bf16.msra.mxu1 %v3172_v61  ;;  %v2038_v61 = vld [vmem:[%s4566_s9 + $0x68] sm:$0xff] }
 0x5dc   :  { %3183 = vmatprep.subr.bf16.mxu1 %v3182_v63  ;;  %v2039_v63 = vld [vmem:[%s4566_s9 + $0x70] sm:$0xff] }
 0x5dd   :  { %v3226_v3 = vpack.c.bf16 %v2040_v2, %v2039_v63  ;;  %v2390_v63 = vld [vmem:[#allocation20 + $0xb8] sm:$0xff] }
 0x5df   :  { %v3479_v24 = vpop.eup %3478 }
 0x5e0   :  { %1273 = vrot.lane.b32.xlu1 %v3479_v24, %s3875_s12 }
 0x5e4   :  { %1787 = vrot.lane.b32.xlu1 %v4252_v45, %s3876_s2  ;;  %v1613_v45 = vld [vmem:[#allocation17 + $0x350] sm:$0xff] }
 0x5e5   :  { %v3180_v62 = vpack.c.bf16 %v1617_v59, %v1613_v45  ;;  %v3217_v45 = vpack.c.bf16 %v2034_v57, %v2033_v56  ;;  %v2036_v59 = vld [vmem:[%s4566_s9 + $0x58] sm:$0xff]  ;;  %v2379_v56 = vld [vmem:[#allocation20 + $0x60] sm:$0xff] }
 0x5e6   :  { %v3220_v25 = vpack.c.bf16 %v2036_v59, %v2035_v58  ;;  %v2381_v57 = vld [vmem:[#allocation20 + $0x70] sm:$0xff]  ;;  %v2386_v58 = vld [vmem:[#allocation20 + $0x98] sm:$0xff] }
 0x5e7   :  { %3181 = vmatpush1.bf16.msra.mxu0 %v3180_v62  ;;  %v3223_v62 = vpack.c.bf16 %v2038_v61, %v2037_v60  ;;  %v3260_v59 = vpack.c.bf16 %v2381_v57, %v2379_v56  ;;  %v2383_v60 = vld [vmem:[#allocation20 + $0x80] sm:$0xff]  ;;  %v2385_v61 = vld [vmem:[#allocation20 + $0x90] sm:$0xff] }
 0x5e8   :  { %3191 = vmatprep.subr.bf16.mxu0 %v3190_v4  ;;  %v2368_v4 = vld [vmem:[#allocation20 + $0x8] sm:$0xff]  ;;  %v3264_v2 = vpack.c.bf16 %v2385_v61, %v2383_v60  ;;  %v2415_v56 = vld [vmem:[#allocation20 + $0x180] sm:$0xff]  ;;  %v2417_v57 = vld [vmem:[#allocation20 + $0x190] sm:$0xff] }
 0x5e9   :  { %v2419_v60 = vld [vmem:[#allocation20 + $0x1a0] sm:$0xff]  ;;  %v2421_v61 = vld [vmem:[#allocation20 + $0x1b0] sm:$0xff] }
 0x652   :  { %v1274_v5 = vpop.permute.xlu1 %1273 }
 0x653   :  { %v1276_v53 = vmul.f32 %v4247_v39, %v1274_v5  ;;  %v3188_v39 = vpack.c.bf16 %v1782_v19, %v1778_v17  ;;  %v2370_v5 = vld [vmem:[#allocation20 + $0x18] sm:$0xff]  ;;  %v2826_v19 = vld [vmem:[#allocation11] ss:$0 sm:$0xff] }
 0x655   :  { %1620 = vrot.lane.b32.xlu0 %v1276_v53, %s3860_s5  ;;  %v3246_v53 = vpack.c.bf16 %v2370_v5, %v2368_v4  ;;  %v2387_v4 = vld [vmem:[#allocation20 + $0xa0] sm:$0xff]  ;;  %v2389_v5 = vld [vmem:[#allocation20 + $0xb0] sm:$0xff] }
 0x656   :  { %v1788_v36 = vpop.permute.xlu1 %1787 }
 0x6c7   :  { %v1621_v24 = vpop.permute.xlu0 %1620 }
 0x6c8   :  { %2822 = vmatmul.mubr.msk.f32.vlgmr.msra.gmra.mrb[4].mxu1 %vm250_vm1, %v1621_v24  ;;  %2823 = vmatmul.mubr.msk.f32.vlgmr.msra.gmra.mrb[0].mxu0 %vm250_vm1, %v1621_v24 }
 0x6c9   :  { %3185 = vmatpush1.bf16.msra.mxu1 %v3184_v15  ;;  %3193 = vmatpush1.bf16.msra.mxu0 %v3192_v16 }
 0x6ca   :  { %3187 = vmatprep.subr.bf16.mxu1 %v3186_v18  ;;  %3195 = vmatprep.subr.bf16.mxu0 %v3194_v20 }
 0x6cb   :  { %1855 = vmatprep.mubr.f32.mxu1 %v3874_v1  ;;  %1926 = vmatprep.mubr.f32.mxu0 %v3874_v1 }
 0x6cd   :  { %3189 = vmatpush1.bf16.msra.mxu1 %v3188_v39  ;;  %3197 = vmatpush1.bf16.msra.mxu0 %v3196_v26 }
 0x6ce   :  { %3198 = vmatprep.subr.bf16.mxu1 %v3872_v0  ;;  %3204 = vmatprep.subr.bf16.mxu0 %v3872_v0 }
 0x6d0   :  { %2824 = vmatmul.mubr.msk.f32.vlgmr.msra.gmra.mrb[4].mxu1 %vm250_vm1, %v1788_v36  ;;  %2825 = vmatmul.mubr.msk.f32.vlgmr.msra.gmra.mrb[0].mxu0 %vm250_vm1, %v1788_v36  ;;  %v3248_v36 = vpack.c.bf16 %v2369_v32, %v2367_v30  ;;  %v2401_v30 = vld [vmem:[#allocation20 + $0x110] sm:$0xff]  ;;  %v2404_v32 = vld [vmem:[#allocation20 + $0x128] sm:$0xff] }
 0x6d1   :  { %3200 = vmatpush3.bf16.msra.mxu1 %v3199_v33  ;;  %2981 = vmatprep.mubr.msk.f32.mxu1 %vm3873_vm0, %v3874_v1  ;;  %v2372_v33 = vld [vmem:[#allocation20 + $0x28] sm:$0xff] }
 0x6d2   :  { %3201 = vmatprep.subr.bf16.mxu1 %v3872_v0  ;;  %3206 = vmatpush3.bf16.msra.mxu0 %v3205_v35  ;;  %v3250_v38 = vpack.c.bf16 %v2374_v31, %v2372_v33 }
 0x6d3   :  { %3207 = vmatprep.subr.bf16.mxu0 %v3872_v0  ;;  %3016 = vmatprep.mubr.msk.f32.mxu0 %vm3873_vm0, %v3874_v1 }
 0x6d5   :  { %3203 = vmatpush3.bf16.msra.mxu1 %v3202_v37 }
 0x6d6   :  { %3228 = vmatprep.subr.bf16.mxu1 %v3872_v0  ;;  %3209 = vmatpush3.bf16.msra.mxu0 %v3208_v21  ;;  %v2378_v21 = vld [vmem:[#allocation20 + $0x58] sm:$0xff] }
 0x6d7   :  { %3210 = vmatprep.subr.bf16.mxu0 %v3872_v0 }
 0x6d8   :  { %2982 = vmatmul.mubr.msk.f32.vlgmr.msra.gmra.mrb[10].mxu1 %vm250_vm1, %v1621_v24 }
 0x6d9   :  { %3035 = vmatprep.mubr.msk.f32.mxu1 %vm3873_vm0, %v3874_v1 }
 0x6da   :  { %3212 = vmatpush3.bf16.msra.mxu0 %v3211_v50  ;;  %v2380_v50 = vld [vmem:[#allocation20 + $0x68] sm:$0xff] }
 0x6db   :  { %3213 = vmatprep.subr.bf16.mxu0 %v3872_v0 }
 0x6de   :  { %3215 = vmatpush3.bf16.msra.mxu0 %v3214_v55  ;;  %v3258_v55 = vpack.c.bf16 %v2382_v51, %v2380_v50  ;;  %v2416_v50 = vld [vmem:[#allocation20 + $0x188] sm:$0xff]  ;;  %v2418_v51 = vld [vmem:[#allocation20 + $0x198] sm:$0xff] }
 0x6df   :  { %3216 = vmatprep.subr.bf16.mxu0 %v3872_v0 }
 0x6e2   :  { %3218 = vmatpush3.bf16.msra.mxu0 %v3217_v45  ;;  %v2384_v45 = vld [vmem:[#allocation20 + $0x88] sm:$0xff] }
 0x6e3   :  { %3219 = vmatprep.subr.bf16.mxu0 %v3872_v0 }
 0x6e6   :  { %3221 = vmatpush3.bf16.msra.mxu0 %v3220_v25  ;;  %v3262_v25 = vpack.c.bf16 %v2386_v58, %v2384_v45  ;;  %v2420_v45 = vld [vmem:[#allocation20 + $0x1a8] sm:$0xff]  ;;  %v2422_v58 = vld [vmem:[#allocation20 + $0x1b8] sm:$0xff] }
 0x6e7   :  { %3222 = vmatprep.subr.bf16.mxu0 %v3872_v0 }
 0x6ea   :  { %3224 = vmatpush3.bf16.msra.mxu0 %v3223_v62  ;;  %v2388_v62 = vld [vmem:[#allocation20 + $0xa8] sm:$0xff] }
 0x6eb   :  { %3225 = vmatprep.subr.bf16.mxu0 %v3872_v0 }
 0x6ee   :  { %3227 = vmatpush3.bf16.msra.mxu0 %v3226_v3  ;;  %v3266_v3 = vpack.c.bf16 %v2390_v63, %v2388_v62  ;;  %v2424_v62 = vld [vmem:[#allocation20 + $0x1c8] sm:$0xff]  ;;  %v2426_v63 = vld [vmem:[#allocation20 + $0x1d8] sm:$0xff] }
 0x6ef   :  { %3247 = vmatprep.subr.bf16.mxu0 %v3246_v53  ;;  %v2392_v53 = vld [vmem:[#allocation20 + $0xc8] sm:$0xff] }
 0x7a3   :  { %v4368_v8 = vpop.f32.mrb[4].mxu1  ;;  %v1928_v9 = vpop.f32.mrb[0].mxu0 }
 0x7a4   :  { %v3406_v11 = vadd.f32 %v1928_v9, %v4218_v10  ;;  %v1859_v12 = vpop.f32.mrb[5].mxu1  ;;  %v1930_v13 = vpop.f32.mrb[1].mxu0  ;;  %v3268_v9 = vpack.c.bf16 %v2389_v5, %v2387_v4  ;;  %v3302_v4 = vpack.c.bf16 %v2426_v63, %v2424_v62  ;;  %v2423_v5 = vld [vmem:[#allocation20 + $0x1c0] sm:$0xff] }
 0x7a5   :  { %v2336_v14 = vadd.f32 %v2322_v7, %v1859_v12  ;;  %v3407_v15 = vadd.f32 %v1930_v13, %v4220_v54  ;;  %v2394_v7 = vld [vmem:[#allocation20 + $0xd8] sm:$0xff]  ;;  %v2391_v12 = vld [vmem:[#allocation20 + $0xc0] sm:$0xff]  ;;  %v2393_v13 = vld [vmem:[#allocation20 + $0xd0] sm:$0xff] }
 0x7a6   :  { %v4372_v16 = vadd.f32 %v3406_v11, %v2326_v47  ;;  %v3252_v47 = vpack.c.bf16 %v2373_v42, %v2371_v41  ;;  %v3270_v11 = vpack.c.bf16 %v2394_v7, %v2392_v53  ;;  %v2425_v53 = vld [vmem:[#allocation20 + $0x1d0] sm:$0xff] }
 0x7a7   :  { %v2345_v17 = vmul.f32 1.442695, %v2336_v14  ;;  %v4374_v18 = vadd.f32 %v3407_v15, %v2330_v48  ;;  %vm2340_vm3 = vcmp.gt.f32.partialorder %v2336_v14, 0.0  ;;  %v3254_v48 = vpack.c.bf16 %v2378_v21, %v2376_v46  ;;  %v2398_v15 = vld [vmem:[#allocation20 + $0xf8] sm:$0xff]  ;;  %v2409_v46 = vld [vmem:[#allocation20 + $0x150] sm:$0xff]  ;;  %v2412_v21 = vld [vmem:[#allocation20 + $0x168] sm:$0xff] }
 0x7a8   :  { %vm2341_vm10 = vcmp.gt.f32.partialorder %v4372_v16, 0.0 }
 0x7a9   :  { %3480 = vpow2.f32 %v2345_v17  ;;  %v3272_v17 = vpack.c.bf16 %v2393_v13, %v2391_v12  ;;  %v3304_v12 = vpack.c.bf16 %v2425_v53, %v2423_v5  ;;  %vm2342_vm8 = vcmp.gt.f32.partialorder %v4374_v18, 0.0  ;;  %v2436_v53 = vld [vmem:[#allocation20 + $0x228] sm:$0xff] }
 0x7ab   :  { %v2014_v20 = vpop.f32.mrb[10].mxu1 }
 0x7ac   :  { %v2015_v22 = vadd.f32 %v2826_v19, %v2014_v20  ;;  %v2983_v23 = vpop.f32.mrb[11].mxu1  ;;  %v2317_v19 = vsub.s32 0, %v4308_v40 }
 0x7ad   :  { %v2397_v23 = vld [vmem:[#allocation20 + $0xf0] sm:$0xff] }
 0x7ae   :  { %v2019_v24 = vmul.f32 1.442695, %v2015_v22  ;;  %vm2018_vm4 = vcmp.gt.f32.partialorder %v2015_v22, 0.0 }
 0x7b0   :  { %3482 = vpow2.f32 %v2019_v24  ;;  %v2400_v24 = vld [vmem:[#allocation20 + $0x108] sm:$0xff] }
 0x7b3   :  { %v3481_v39 = vpop.eup %3480 }
 0x7b4   :  { %v2838_v26 = vadd.f32 -1.0, %v3481_v39  ;;  %v2402_v39 = vld [vmem:[#allocation20 + $0x118] sm:$0xff] }
 0x7b6   :  { %v2356_v28 = vmul.f32 1.6732632, %v2838_v26 }
 0x7b8   :  { %v2360_v34 = vsel %vm2340_vm3, %v2336_v14, %v2356_v28  ;;  %v2396_v14 = vld [vmem:[#allocation20 + $0xe8] sm:$0xff]  ;;  %v3278_v28 = vpack.c.bf16 %v2402_v39, %v2400_v24  ;;  %v2125_v24 = vld [vmem:[%s4568_s11] sm:$0xff] }
 0x7b9   :  { %v2364_v43 = vmul.f32 1.050701, %v2360_v34  ;;  %v3274_v20 = vpack.c.bf16 %v2398_v15, %v2396_v14  ;;  %v2427_v14 = vld [vmem:[#allocation20 + $0x1e0] sm:$0xff]  ;;  %v2429_v15 = vld [vmem:[#allocation20 + $0x1f0] sm:$0xff] }
 0x7ba   :  { %v3483_v10 = vpop.eup %3482  ;;  %v2126_v39 = vld [vmem:[%s4568_s11 + $0x8] sm:$0xff] }
 0x7bb   :  { %v2828_v29 = vadd.f32 -1.0, %v3483_v10  ;;  %v2318_v10 = vrot.slane %v4317_v44, %v2317_v19 }
 0x7bd   :  { %v2022_v54 = vmul.f32 1.6732632, %v2828_v29  ;;  %v2399_v29 = vld [vmem:[#allocation20 + $0x100] sm:$0xff]  ;;  %v4381_v31 = vadd.f32 %v2318_v10, %v4368_v8  ;;  %v2127_v10 = vld [vmem:[%s4568_s11 + $0x10] sm:$0xff] }
 0x7be   :  { %v3280_v33 = vpack.c.bf16 %v2401_v30, %v2399_v29  ;;  %v2129_v30 = vld [vmem:[%s4568_s11 + $0x20] sm:$0xff] }
 0x7bf   :  { %v2023_v35 = vsel %vm2018_vm4, %v2015_v22, %v2022_v54  ;;  %v2395_v22 = vld [vmem:[#allocation20 + $0xe0] sm:$0xff]  ;;  %v2406_v54 = vld [vmem:[#allocation20 + $0x138] sm:$0xff]  ;;  %v2343_v44 = vmul.f32 1.442695, %v4381_v31  ;;  %vm2339_vm5 = vcmp.gt.f32.partialorder %v4381_v31, 0.0 }
 0x7c0   :  { %v2024_v37 = vmul.f32 1.050701, %v2023_v35  ;;  %v3276_v26 = vpack.c.bf16 %v2397_v23, %v2395_v22  ;;  %v3282_v34 = vpack.c.bf16 %v2406_v54, %v2404_v32  ;;  %v2403_v35 = vld [vmem:[#allocation20 + $0x120] sm:$0xff] }
 0x7c1   :  { %3484 = vpow2.f32 %v2343_v44  ;;  %v2130_v32 = vld [vmem:[%s4568_s11 + $0x28] sm:$0xff] }
 0x7c2   :  { %3017 = vmatmul.mubr.f32.vlgmr.msra.gmra.mrb[4].mxu0 %v2024_v37  ;;  %v2408_v37 = vld [vmem:[#allocation20 + $0x148] sm:$0xff]  ;;  %v3235_v54 = vpack.c.bf16 %v2130_v32, %v2129_v30  ;;  %v2443_v32 = vld [vmem:[#allocation20 + $0x260] sm:$0xff] }
 0x7c3   :  { %3249 = vmatpush1.bf16.msra.mxu0 %v3248_v36  ;;  %2571 = vmatprep.mubr.f32.mxu0 %v2364_v43  ;;  %v2405_v36 = vld [vmem:[#allocation20 + $0x130] sm:$0xff]  ;;  %v2407_v43 = vld [vmem:[#allocation20 + $0x140] sm:$0xff] }
 0x7c4   :  { %3251 = vmatprep.subr.bf16.mxu0 %v3250_v38  ;;  %v2410_v38 = vld [vmem:[#allocation20 + $0x158] sm:$0xff]  ;;  %v3284_v41 = vpack.c.bf16 %v2405_v36, %v2403_v35  ;;  %v2829_v35 = vld [vmem:[#allocation13] ss:$0 sm:$0xff] }
 0x7c5   :  { %v3286_v42 = vpack.c.bf16 %v2410_v38, %v2408_v37 }
 0x7c7   :  { %3253 = vmatpush1.bf16.msra.mxu0 %v3252_v47  ;;  %v2414_v47 = vld [vmem:[#allocation20 + $0x178] sm:$0xff] }
 0x7c8   :  { %3255 = vmatprep.subr.bf16.mxu0 %v3254_v48  ;;  %v3288_v48 = vpack.c.bf16 %v2409_v46, %v2407_v43  ;;  %v3290_v8 = vpack.c.bf16 %v2414_v47, %v2412_v21 }
 0x7cb   :  { %3257 = vmatpush1.bf16.msra.mxu0 %v3256_v52  ;;  %v3292_v52 = vpack.c.bf16 %v2413_v27, %v2411_v49  ;;  %v2222_v49 = vld [vmem:[%s4570_s13 + $0x8] sm:$0xff] }
 0x7cc   :  { %3259 = vmatprep.subr.bf16.mxu0 %v3258_v55  ;;  %v3294_v55 = vpack.c.bf16 %v2418_v51, %v2416_v50  ;;  %v2224_v50 = vld [vmem:[%s4570_s13 + $0x18] sm:$0xff] }
 0x7cf   :  { %3261 = vmatpush1.bf16.msra.mxu0 %v3260_v59  ;;  %v3296_v59 = vpack.c.bf16 %v2417_v57, %v2415_v56  ;;  %v2349_v57 = vmul.f32 1.442695, %v4374_v18 }
 0x7d0   :  { %3263 = vmatprep.subr.bf16.mxu0 %v3262_v25  ;;  %v3298_v25 = vpack.c.bf16 %v2422_v58, %v2420_v45  ;;  %v2831_v45 = vld [vmem:[#allocation14] ss:$0 sm:$0xff] }
 0x7d3   :  { %3265 = vmatpush1.bf16.msra.mxu0 %v3264_v2  ;;  %v3485_v2 = vpop.eup %3484 }
 0x7d4   :  { %3267 = vmatprep.subr.bf16.mxu0 %v3266_v3  ;;  %v3300_v3 = vpack.c.bf16 %v2421_v61, %v2419_v60  ;;  %v2837_v7 = vadd.f32 -1.0, %v3485_v2 }
 0x7d7   :  { %3269 = vmatpush1.bf16.msra.mxu0 %v3268_v9  ;;  %v2428_v9 = vld [vmem:[#allocation20 + $0x1e8] sm:$0xff] }
 0x7d8   :  { %3271 = vmatprep.subr.bf16.mxu0 %v3270_v11  ;;  %v2430_v11 = vld [vmem:[#allocation20 + $0x1f8] sm:$0xff] }
 0x7d9   :  { %v3306_v13 = vpack.c.bf16 %v2430_v11, %v2428_v9 }
 0x7db   :  { %3273 = vmatpush1.bf16.msra.mxu0 %v3272_v17  ;;  %v2355_v17 = vmul.f32 1.6732632, %v2837_v7  ;;  %v2438_v7 = vld [vmem:[#allocation20 + $0x238] sm:$0xff] }
 0x7dc   :  { %3275 = vmatprep.subr.bf16.mxu0 %v3274_v20  ;;  %v3308_v20 = vpack.c.bf16 %v2429_v15, %v2427_v14  ;;  %v3314_v14 = vpack.c.bf16 %v2438_v7, %v2436_v53  ;;  %v2435_v15 = vld [vmem:[#allocation20 + $0x220] sm:$0xff]  ;;  %v2472_v53 = vld [vmem:[#allocation20 + $0x348] sm:$0xff]  ;;  %v2474_v7 = vld [vmem:[#allocation20 + $0x358] sm:$0xff] }
 0x7dd   :  { %v2359_v22 = vsel %vm2339_vm5, %v4381_v31, %v2355_v17  ;;  %v2132_v31 = vld [vmem:[%s4568_s11 + $0x38] sm:$0xff] }
 0x7de   :  { %v2363_v23 = vmul.f32 1.050701, %v2359_v22  ;;  %v2437_v17 = vld [vmem:[#allocation20 + $0x230] sm:$0xff]  ;;  %v2440_v22 = vld [vmem:[#allocation20 + $0x248] sm:$0xff] }
 0x7df   :  { %3277 = vmatpush1.bf16.msra.mxu0 %v3276_v26  ;;  %v3229_v26 = vpack.c.bf16 %v2126_v39, %v2125_v24  ;;  %v3316_v24 = vpack.c.bf16 %v2437_v17, %v2435_v15  ;;  %v2476_v15 = vld [vmem:[#allocation20 + $0x368] sm:$0xff]  ;;  %v2478_v17 = vld [vmem:[#allocation20 + $0x378] sm:$0xff] }
 0x7e0   :  { %3279 = vmatprep.subr.bf16.mxu0 %v3278_v28  ;;  %v2128_v28 = vld [vmem:[%s4568_s11 + $0x18] sm:$0xff] }
 0x7e1   :  { %3230 = vmatpush3.bf16.msra.mxu1 %v3229_v26  ;;  %v3232_v29 = vpack.c.bf16 %v2128_v28, %v2127_v10  ;;  %v2439_v26 = vld [vmem:[#allocation20 + $0x240] sm:$0xff]  ;;  %v2441_v10 = vld [vmem:[#allocation20 + $0x250] sm:$0xff]  ;;  %v2444_v28 = vld [vmem:[#allocation20 + $0x268] sm:$0xff] }
 0x7e2   :  { %3231 = vmatprep.subr.bf16.mxu1 %v3872_v0 }
 0x7e3   :  { %3281 = vmatpush1.bf16.msra.mxu0 %v3280_v33  ;;  %v2131_v33 = vld [vmem:[%s4568_s11 + $0x30] sm:$0xff] }
 0x7e4   :  { %3283 = vmatprep.subr.bf16.mxu0 %v3282_v34  ;;  %v3238_v34 = vpack.c.bf16 %v2132_v31, %v2131_v33  ;;  %v2448_v33 = vld [vmem:[#allocation20 + $0x288] sm:$0xff]  ;;  %v2450_v31 = vld [vmem:[#allocation20 + $0x298] sm:$0xff] }
 0x7e5   :  { %3233 = vmatpush3.bf16.msra.mxu1 %v3232_v29  ;;  %v3320_v29 = vpack.c.bf16 %v2441_v10, %v2439_v26  ;;  %v2482_v26 = vld [vmem:[#allocation20 + $0x398] sm:$0xff] }
 0x7e6   :  { %3234 = vmatprep.subr.bf16.mxu1 %v3872_v0 }
 0x7e7   :  { %3285 = vmatpush1.bf16.msra.mxu0 %v3284_v41 }
 0x7e8   :  { %3287 = vmatprep.subr.bf16.mxu0 %v3286_v42 }
 0x7e9   :  { %3236 = vmatpush3.bf16.msra.mxu1 %v3235_v54  ;;  %v2445_v54 = vld [vmem:[#allocation20 + $0x270] sm:$0xff] }
 0x7ea   :  { %3237 = vmatprep.subr.bf16.mxu1 %v3872_v0 }
 0x7eb   :  { %3289 = vmatpush1.bf16.msra.mxu0 %v3288_v48 }
 0x7ec   :  { %3291 = vmatprep.subr.bf16.mxu0 %v3290_v8  ;;  %v2221_v8 = vld [vmem:[%s4570_s13] sm:$0xff] }
 0x7ed   :  { %3239 = vmatpush3.bf16.msra.mxu1 %v3238_v34  ;;  %v3241_v27 = vpack.c.bf16 %v2222_v49, %v2221_v8  ;;  %v3324_v34 = vpack.c.bf16 %v2445_v54, %v2443_v32  ;;  %v2458_v8 = vld [vmem:[#allocation20 + $0x2d8] sm:$0xff] }
 0x7ee   :  { %3240 = vmatprep.subr.bf16.mxu1 %v3872_v0  ;;  %v2486_v32 = vld [vmem:[#allocation20 + $0x3b8] sm:$0xff] }
 0x7ef   :  { %3293 = vmatpush1.bf16.msra.mxu0 %v3292_v52  ;;  %v2432_v52 = vld [vmem:[#allocation20 + $0x208] sm:$0xff] }
 0x7f0   :  { %3295 = vmatprep.subr.bf16.mxu0 %v3294_v55  ;;  %v2434_v55 = vld [vmem:[#allocation20 + $0x218] sm:$0xff] }
 0x7f1   :  { %v3310_v56 = vpack.c.bf16 %v2434_v55, %v2432_v52  ;;  %v2462_v52 = vld [vmem:[#allocation20 + $0x2f8] sm:$0xff] }
 0x7f3   :  { %3297 = vmatpush1.bf16.msra.mxu0 %v3296_v59 }
 0x7f4   :  { %3299 = vmatprep.subr.bf16.mxu0 %v3298_v25 }
 0x7f7   :  { %3301 = vmatpush1.bf16.msra.mxu0 %v3300_v3  ;;  %v2431_v3 = vld [vmem:[#allocation20 + $0x200] sm:$0xff] }
 0x7f8   :  { %3303 = vmatprep.subr.bf16.mxu0 %v3302_v4  ;;  %v2433_v4 = vld [vmem:[#allocation20 + $0x210] sm:$0xff] }
 0x7fb   :  { %3305 = vmatpush1.bf16.msra.mxu0 %v3304_v12  ;;  %v3312_v12 = vpack.c.bf16 %v2433_v4, %v2431_v3  ;;  %v2467_v4 = vld [vmem:[#allocation20 + $0x320] sm:$0xff] }
 0x7fc   :  { %3307 = vmatprep.subr.bf16.mxu0 %v3306_v13 }
 0x7ff   :  { %3309 = vmatpush1.bf16.msra.mxu0 %v3308_v20 }
 0x802   :  { %2572 = vmatmul.mubr.f32.vlgmr.msra.gmra.mrb[6].mxu0 %v2363_v23  ;;  %v2442_v23 = vld [vmem:[#allocation20 + $0x258] sm:$0xff] }
 0x803   :  { %v3318_v39 = vpack.c.bf16 %v2442_v23, %v2440_v22  ;;  %v3354_v22 = vpack.c.bf16 %v2478_v17, %v2476_v15  ;;  %v2475_v23 = vld [vmem:[#allocation20 + $0x360] sm:$0xff] }
 0x804   :  { %v2687_v17 = vld [vmem:[%s4606_s23 + $0xc0] sm:$0xff] }
 0x895   :  { %v2114_v36 = vpop.f32.mrb[4].mxu0 }
 0x896   :  { %v2115_v37 = vadd.f32 %v2829_v35, %v2114_v36  ;;  %v3018_v38 = vpop.f32.mrb[5].mxu0  ;;  %v3326_v35 = vpack.c.bf16 %v2450_v31, %v2448_v33  ;;  %v2447_v36 = vld [vmem:[#allocation20 + $0x280] sm:$0xff] }
 0x897   :  { %v2452_v38 = vld [vmem:[#allocation20 + $0x2a8] sm:$0xff]  ;;  %v2483_v31 = vld [vmem:[#allocation20 + $0x3a0] sm:$0xff] }
 0x898   :  { %v2119_v41 = vmul.f32 1.442695, %v2115_v37  ;;  %vm2118_vm6 = vcmp.gt.f32.partialorder %v2115_v37, 0.0 }
 0x89a   :  { %3486 = vpow2.f32 %v2119_v41  ;;  %v2454_v41 = vld [vmem:[#allocation20 + $0x2b8] sm:$0xff] }
 0x89b   :  { %3488 = vpow2.f32 %v2349_v57  ;;  %v2459_v57 = vld [vmem:[#allocation20 + $0x2e0] sm:$0xff] }
 0x8a4   :  { %v3487_v44 = vpop.eup %3486 }
 0x8a5   :  { %v2830_v42 = vadd.f32 -1.0, %v3487_v44  ;;  %v3489_v60 = vpop.eup %3488 }
 0x8a6   :  { %v2840_v61 = vadd.f32 -1.0, %v3489_v60  ;;  %v2463_v60 = vld [vmem:[#allocation20 + $0x300] sm:$0xff] }
 0x8a7   :  { %v2122_v43 = vmul.f32 1.6732632, %v2830_v42  ;;  %v3330_v42 = vpack.c.bf16 %v2454_v41, %v2452_v38 }
 0x8a8   :  { %v2358_v63 = vmul.f32 1.6732632, %v2840_v61  ;;  %v2465_v61 = vld [vmem:[#allocation20 + $0x310] sm:$0xff] }
 0x8a9   :  { %v2123_v46 = vsel %vm2118_vm6, %v2115_v37, %v2122_v43  ;;  %v2449_v37 = vld [vmem:[#allocation20 + $0x290] sm:$0xff]  ;;  %v2451_v43 = vld [vmem:[#allocation20 + $0x2a0] sm:$0xff] }
 0x8aa   :  { %v2124_v21 = vmul.f32 1.050701, %v2123_v46  ;;  %v2362_v9 = vsel %vm2342_vm8, %v4374_v18, %v2358_v63  ;;  %v2446_v18 = vld [vmem:[#allocation20 + $0x278] sm:$0xff]  ;;  %v3328_v44 = vpack.c.bf16 %v2449_v37, %v2447_v36  ;;  %v2453_v46 = vld [vmem:[#allocation20 + $0x2b0] sm:$0xff] }
 0x8ab   :  { %v2366_v20 = vmul.f32 1.050701, %v2362_v9  ;;  %v3322_v30 = vpack.c.bf16 %v2446_v18, %v2444_v28  ;;  %v3332_v49 = vpack.c.bf16 %v2453_v46, %v2451_v43  ;;  %v2470_v63 = vld [vmem:[#allocation20 + $0x338] sm:$0xff]  ;;  %v2479_v18 = vld [vmem:[#allocation20 + $0x380] sm:$0xff]  ;;  %v2492_v46 = vld [vmem:[#allocation20 + $0x3e8] sm:$0xff] }
 0x8ac   :  { %3036 = vmatmul.mubr.msk.f32.vlgmr.msra.gmra.mrb[12].mxu1 %vm2140_vm7, %v2124_v21  ;;  %v2456_v21 = vld [vmem:[#allocation20 + $0x2c8] sm:$0xff]  ;;  %v2490_v36 = vld [vmem:[#allocation20 + $0x3d8] sm:$0xff] }
 0x8ad   :  { %3046 = vmatprep.mubr.msk.f32.mxu1 %vm3873_vm0, %v3874_v1  ;;  %3242 = vmatpush3.bf16.msra.mxu1 %v3241_v27  ;;  %v2223_v1 = vld [vmem:[%s4570_s13 + $0x10] sm:$0xff]  ;;  %v3334_v27 = vpack.c.bf16 %v2458_v8, %v2456_v21  ;;  %v2494_v21 = vld [vmem:[#allocation20 + $0x3f8] sm:$0xff] }
 0x8ae   :  { %3243 = vmatprep.subr.bf16.mxu1 %v3872_v0  ;;  %v3244_v51 = vpack.c.bf16 %v2224_v50, %v2223_v1  ;;  %v2455_v1 = vld [vmem:[#allocation20 + $0x2c0] sm:$0xff]  ;;  %v2457_v50 = vld [vmem:[#allocation20 + $0x2d0] sm:$0xff] }
 0x8af   :  { %v3336_v55 = vpack.c.bf16 %v2457_v50, %v2455_v1  ;;  %v2493_v1 = vld [vmem:[#allocation20 + $0x3f0] sm:$0xff] }
 0x8b1   :  { %3245 = vmatpush3.bf16.msra.mxu1 %v3244_v51  ;;  %v2460_v51 = vld [vmem:[#allocation20 + $0x2e8] sm:$0xff] }
 0x8b2   :  { %3311 = vmatprep.subr.bf16.mxu1 %v3310_v56  ;;  %v3338_v56 = vpack.c.bf16 %v2462_v52, %v2460_v51 }
 0x8d5   :  { %v4416_v47 = vpop.f32.mrb[6].mxu0 }
 0x8d6   :  { %v4418_v48 = vpop.f32.mrb[7].mxu0 }
 0x97f   :  { %v2210_v58 = vpop.f32.mrb[12].mxu1 }
 0x980   :  { %v2211_v0 = vadd.f32 %v2831_v45, %v2210_v58  ;;  %v3037_v59 = vpop.f32.mrb[13].mxu1  ;;  %v2461_v45 = vld [vmem:[#allocation20 + $0x2f0] sm:$0xff]  ;;  %v2464_v58 = vld [vmem:[#allocation20 + $0x308] sm:$0xff] }
 0x981   :  { %v3340_v59 = vpack.c.bf16 %v2461_v45, %v2459_v57  ;;  %v2680_v57 = vld [vmem:[%s4606_s23 + $0x88] sm:$0xff]  ;;  %v2663_v45 = vld [vmem:[%s4606_s23] sm:$0xff] }
 0x982   :  { %v2215_v25 = vmul.f32 1.442695, %v2211_v0  ;;  %vm2214_vm9 = vcmp.gt.f32.partialorder %v2211_v0, 0.0 }
 0x984   :  { %3490 = vpow2.f32 %v2215_v25 }
 0x98e   :  { %v3491_v62 = vpop.eup %3490 }
 0x98f   :  { %v2833_v2 = vadd.f32 -1.0, %v3491_v62  ;;  %v2468_v62 = vld [vmem:[#allocation20 + $0x328] sm:$0xff] }
 0x990   :  { %v3346_v3 = vpack.c.bf16 %v2470_v63, %v2468_v62  ;;  %v2666_v62 = vld [vmem:[%s4606_s23 + $0x18] sm:$0xff] }
 0x991   :  { %v2218_v5 = vmul.f32 1.6732632, %v2833_v2  ;;  %v3344_v2 = vpack.c.bf16 %v2465_v61, %v2463_v60  ;;  %v2665_v61 = vld [vmem:[%s4606_s23 + $0x10] sm:$0xff] }
 0x992   :  { %v3380_v63 = vpack.c.bf16 %v2666_v62, %v2665_v61 }
 0x993   :  { %v2219_v11 = vsel %vm2214_vm9, %v2211_v0, %v2218_v5  ;;  %v2466_v0 = vld [vmem:[#allocation20 + $0x318] sm:$0xff]  ;;  %v2469_v5 = vld [vmem:[#allocation20 + $0x330] sm:$0xff] }
 0x994   :  { %v2220_v13 = vmul.f32 1.050701, %v2219_v11  ;;  %v3342_v25 = vpack.c.bf16 %v2466_v0, %v2464_v58  ;;  %v3348_v9 = vpack.c.bf16 %v2469_v5, %v2467_v4  ;;  %v2347_v11 = vmul.f32 1.442695, %v4372_v16  ;;  %v2681_v0 = vld [vmem:[%s4606_s23 + $0x90] sm:$0xff]  ;;  %v2667_v5 = vld [vmem:[%s4606_s23 + $0x20] sm:$0xff] }
 0x996   :  { %3047 = vmatmul.mubr.msk.f32.vlgmr.msra.gmra.mrb[14].mxu1 %vm250_vm1, %v2220_v13  ;;  %v2471_v13 = vld [vmem:[#allocation20 + $0x340] sm:$0xff]  ;;  %3492 = vpow2.f32 %v2347_v11  ;;  %v2686_v11 = vld [vmem:[%s4606_s23 + $0xb8] sm:$0xff] }
 0x997   :  { %3313 = vmatpush1.bf16.msra.mxu1 %v3312_v12  ;;  %2642 = vmatprep.mubr.f32.mxu1 %v2366_v20  ;;  %v3350_v12 = vpack.c.bf16 %v2474_v7, %v2472_v53  ;;  %v2668_v53 = vld [vmem:[%s4606_s23 + $0x28] sm:$0xff] }
 0x998   :  { %3315 = vmatprep.subr.bf16.mxu1 %v3314_v14  ;;  %v2473_v14 = vld [vmem:[#allocation20 + $0x350] sm:$0xff]  ;;  %v3384_v7 = vpack.c.bf16 %v2668_v53, %v2667_v5 }
 0x999   :  { %v3352_v20 = vpack.c.bf16 %v2473_v14, %v2471_v13  ;;  %v2669_v13 = vld [vmem:[%s4606_s23 + $0x30] sm:$0xff]  ;;  %v2670_v14 = vld [vmem:[%s4606_s23 + $0x38] sm:$0xff] }
 0x99a   :  { %v3388_v15 = vpack.c.bf16 %v2670_v14, %v2669_v13 }
 0x99b   :  { %3317 = vmatpush1.bf16.msra.mxu1 %v3316_v24  ;;  %v2477_v24 = vld [vmem:[#allocation20 + $0x370] sm:$0xff] }
 0x99c   :  { %3319 = vmatprep.subr.bf16.mxu1 %v3318_v39  ;;  %v2480_v39 = vld [vmem:[#allocation20 + $0x388] sm:$0xff]  ;;  %v3356_v10 = vpack.c.bf16 %v2477_v24, %v2475_v23  ;;  %v2671_v23 = vld [vmem:[%s4606_s23 + $0x40] sm:$0xff] }
 0x99d   :  { %v3358_v28 = vpack.c.bf16 %v2482_v26, %v2480_v39  ;;  %v2672_v24 = vld [vmem:[%s4606_s23 + $0x48] sm:$0xff]  ;;  %v2689_v26 = vld [vmem:[%s4606_s23 + $0xd0] sm:$0xff] }
 0x99e   :  { %v3392_v39 = vpack.c.bf16 %v2672_v24, %v2671_v23 }
 0x99f   :  { %3321 = vmatpush1.bf16.msra.mxu1 %v3320_v29  ;;  %v2481_v29 = vld [vmem:[#allocation20 + $0x390] sm:$0xff] }
 0x9a0   :  { %3323 = vmatprep.subr.bf16.mxu1 %v3322_v30  ;;  %v2484_v30 = vld [vmem:[#allocation20 + $0x3a8] sm:$0xff]  ;;  %v3360_v54 = vpack.c.bf16 %v2481_v29, %v2479_v18  ;;  %v3493_v37 = vpop.eup %3492  ;;  %v2674_v29 = vld [vmem:[%s4606_s23 + $0x58] sm:$0xff] }
 0x9a1   :  { %v3362_v33 = vpack.c.bf16 %v2486_v32, %v2484_v30  ;;  %v2839_v43 = vadd.f32 -1.0, %v3493_v37  ;;  %v2673_v18 = vld [vmem:[%s4606_s23 + $0x50] sm:$0xff]  ;;  %v2691_v32 = vld [vmem:[%s4606_s23 + $0xe0] sm:$0xff]  ;;  %v2694_v37 = vld [vmem:[%s4606_s23 + $0xf8] sm:$0xff] }
 0x9a2   :  { %v3396_v30 = vpack.c.bf16 %v2674_v29, %v2673_v18 }
 0x9a3   :  { %3325 = vmatpush1.bf16.msra.mxu1 %v3324_v34  ;;  %v2485_v34 = vld [vmem:[#allocation20 + $0x3b0] sm:$0xff]  ;;  %v2357_v50 = vmul.f32 1.6732632, %v2839_v43  ;;  %v2834_v43 = vld [vmem:[#allocation16] ss:$0 sm:$0xff] }
 0x9a4   :  { %3327 = vmatprep.subr.bf16.mxu1 %v3326_v35  ;;  %v2488_v35 = vld [vmem:[#allocation20 + $0x3c8] sm:$0xff]  ;;  %v3364_v38 = vpack.c.bf16 %v2485_v34, %v2483_v31  ;;  %v2675_v31 = vld [vmem:[%s4606_s23 + $0x60] sm:$0xff] }
 0x9a5   :  { %v3366_v41 = vpack.c.bf16 %v2490_v36, %v2488_v35  ;;  %v2361_v52 = vsel %vm2341_vm10, %v4372_v16, %v2357_v50  ;;  %v2664_v16 = vld [vmem:[%s4606_s23 + $0x8] sm:$0xff]  ;;  %v2693_v36 = vld [vmem:[%s4606_s23 + $0xf0] sm:$0xff] }
 0x9a6   :  { %v2676_v34 = vld [vmem:[%s4606_s23 + $0x68] sm:$0xff] }
 0x9a7   :  { %3329 = vmatpush1.bf16.msra.mxu1 %v3328_v44  ;;  %v2487_v44 = vld [vmem:[#allocation20 + $0x3c0] sm:$0xff]  ;;  %v3400_v35 = vpack.c.bf16 %v2676_v34, %v2675_v31 }
 0x9a8   :  { %3331 = vmatprep.subr.bf16.mxu1 %v3330_v42  ;;  %v2489_v42 = vld [vmem:[#allocation20 + $0x3d0] sm:$0xff] }
 0x9a9   :  { %v3368_v8 = vpack.c.bf16 %v2489_v42, %v2487_v44  ;;  %v2678_v44 = vld [vmem:[%s4606_s23 + $0x78] sm:$0xff] }
 0x9ab   :  { %3333 = vmatpush1.bf16.msra.mxu1 %v3332_v49  ;;  %v3370_v49 = vpack.c.bf16 %v2494_v21, %v2492_v46 }
 0x9ac   :  { %3335 = vmatprep.subr.bf16.mxu1 %v3334_v27  ;;  %v2491_v27 = vld [vmem:[#allocation20 + $0x3e0] sm:$0xff] }
 0x9ad   :  { %v3372_v51 = vpack.c.bf16 %v2493_v1, %v2491_v27 }
 0x9af   :  { %3337 = vmatpush1.bf16.msra.mxu1 %v3336_v55  ;;  %v2365_v55 = vmul.f32 1.050701, %v2361_v52 }
 0x9b0   :  { %3339 = vmatprep.subr.bf16.mxu1 %v3338_v56  ;;  %v2679_v56 = vld [vmem:[%s4606_s23 + $0x80] sm:$0xff] }
 0x9b1   :  { %v3374_v58 = vpack.c.bf16 %v2680_v57, %v2679_v56 }
 0x9b3   :  { %3341 = vmatpush1.bf16.msra.mxu1 %v3340_v59  ;;  %v2682_v59 = vld [vmem:[%s4606_s23 + $0x98] sm:$0xff]  ;;  %3375 = vmatprep.subr.bf16.mxu0 %v3374_v58 }
 0x9b4   :  { %3343 = vmatprep.subr.bf16.mxu1 %v3342_v25  ;;  %v3376_v25 = vpack.c.bf16 %v2664_v16, %v2663_v45  ;;  %v3378_v60 = vpack.c.bf16 %v2682_v59, %v2681_v0 }
 0x9b6   :  { %3377 = vmatpush3.bf16.msra.mxu0 %v3376_v25 }
 0x9b7   :  { %3345 = vmatpush1.bf16.msra.mxu1 %v3344_v2  ;;  %3379 = vmatprep.subr.bf16.mxu0 %v3378_v60  ;;  %v2683_v2 = vld [vmem:[%s4606_s23 + $0xa0] sm:$0xff] }
 0x9b8   :  { %3347 = vmatprep.subr.bf16.mxu1 %v3346_v3  ;;  %v2684_v3 = vld [vmem:[%s4606_s23 + $0xa8] sm:$0xff] }
 0x9b9   :  { %v3382_v4 = vpack.c.bf16 %v2684_v3, %v2683_v2 }
 0x9ba   :  { %3381 = vmatpush3.bf16.msra.mxu0 %v3380_v63 }
 0x9bb   :  { %3349 = vmatpush1.bf16.msra.mxu1 %v3348_v9  ;;  %3383 = vmatprep.subr.bf16.mxu0 %v3382_v4  ;;  %v2685_v9 = vld [vmem:[%s4606_s23 + $0xb0] sm:$0xff] }
 0x9bc   :  { %3351 = vmatprep.subr.bf16.mxu1 %v3350_v12  ;;  %v3386_v12 = vpack.c.bf16 %v2686_v11, %v2685_v9 }
 0x9be   :  { %3385 = vmatpush3.bf16.msra.mxu0 %v3384_v7 }
 0x9bf   :  { %3353 = vmatpush1.bf16.msra.mxu1 %v3352_v20  ;;  %3387 = vmatprep.subr.bf16.mxu0 %v3386_v12  ;;  %v2688_v20 = vld [vmem:[%s4606_s23 + $0xc8] sm:$0xff] }
 0x9c0   :  { %3355 = vmatprep.subr.bf16.mxu1 %v3354_v22  ;;  %v3390_v22 = vpack.c.bf16 %v2688_v20, %v2687_v17 }
 0x9c2   :  { %3389 = vmatpush3.bf16.msra.mxu0 %v3388_v15 }
 0x9c3   :  { %3357 = vmatpush1.bf16.msra.mxu1 %v3356_v10  ;;  %3391 = vmatprep.subr.bf16.mxu0 %v3390_v22  ;;  %v2690_v10 = vld [vmem:[%s4606_s23 + $0xd8] sm:$0xff] }
 0x9c4   :  { %3359 = vmatprep.subr.bf16.mxu1 %v3358_v28  ;;  %v3394_v28 = vpack.c.bf16 %v2690_v10, %v2689_v26 }
 0x9c6   :  { %3393 = vmatpush3.bf16.msra.mxu0 %v3392_v39 }
 0x9c7   :  { %3361 = vmatpush1.bf16.msra.mxu1 %v3360_v54  ;;  %3395 = vmatprep.subr.bf16.mxu0 %v3394_v28  ;;  %v2692_v54 = vld [vmem:[%s4606_s23 + $0xe8] sm:$0xff] }
 0x9c8   :  { %3363 = vmatprep.subr.bf16.mxu1 %v3362_v33  ;;  %v3398_v33 = vpack.c.bf16 %v2692_v54, %v2691_v32 }
 0x9ca   :  { %3397 = vmatpush3.bf16.msra.mxu0 %v3396_v30 }
 0x9cb   :  { %3365 = vmatpush1.bf16.msra.mxu1 %v3364_v38  ;;  %3399 = vmatprep.subr.bf16.mxu0 %v3398_v33  ;;  %v3402_v38 = vpack.c.bf16 %v2694_v37, %v2693_v36 }
 0x9cc   :  { %3367 = vmatprep.subr.bf16.mxu1 %v3366_v41  ;;  %v2677_v41 = vld [vmem:[%s4606_s23 + $0x70] sm:$0xff]  ;;  %s3877_s23 = smov [#allocation25]  }
 0x9cd   :  { %v3404_v42 = vpack.c.bf16 %v2678_v44, %v2677_v41  ;;  %s2780_s19 = sshll.u32 %s3877_s23, 4  ;;  %s2781_s19 = int_to_ptr.vmem [resolvable:$true] %s2780_s19 }
 0x9ce   :  { %3401 = vmatpush3.bf16.msra.mxu0 %v3400_v35  ;;  %s3812_s1 = scalar_lea.vmem %s2781_s19, 32  ;;  %p3817_p1 = scmp.lt.s32.totalorder %s2781_s19, %s2781_s19 }
 0x9cf   :  { %3369 = vmatpush1.bf16.msra.mxu1 %v3368_v8  ;;  %3403 = vmatprep.subr.bf16.mxu0 %v3402_v38  ;;  %p3813_p0 = scmp.ne.s32.totalorder %s2781_s19, %s3812_s1  ;;  %p3818_p2 = scmp.lt.s32.totalorder %s3812_s1, %s3812_s1 }
 0x9d0   :  { %3371 = vmatprep.subr.bf16.mxu1 %v3370_v49 }
 0x9d1   :  { %p3819_p3 = por %p3818_p2, %p3817_p1 }
 0x9d2   :  { %3405 = vmatpush3.bf16.msra.mxu0 %v3404_v42 }
 0x9d3   :  { %3373 = vmatpush1.bf16.msra.mxu1 %v3372_v51  ;;  %v2495_v51 = vld [vmem:[#allocation22] sm:$0x3]  ;;  %p3820_p4 = pnand %p3819_p3, %p3813_p0 }
 0x9d4   :  { %v2500_v52 = vrot.slane %v2495_v51, %v2317_v19 }
 0x9d6   :  { %2643 = vmatmul.mubr.f32.vlgmr.msra.gmra.mrb[16].mxu1 %v2365_v55  ;;  %v2504_v55 = vrot.slane %v2495_v51, %v2321_v6  ;;  %v2574_v56 = vadd.f32 %v4416_v47, %v2500_v52 }
 0x9d8   :  { %v2576_v57 = vadd.f32 %v4418_v48, %v2504_v55 }
 0xa69   :  { %v2301_v46 = vpop.f32.mrb[14].mxu1 }
 0xa6a   :  { %v2302_v21 = vadd.f32 %v2834_v43, %v2301_v46  ;;  %v3048_v8 = vpop.f32.mrb[15].mxu1 }
 0xa6c   :  { %v2836_v49 = vmul.f32 -1.442695, %v2302_v21 }
 0xa6e   :  { %3494 = vpow2.f32 %v2836_v49 }
 0xa78   :  { %v3495_v27 = vpop.eup %3494 }
 0xa79   :  { %v2308_v1 = vadd.f32 1.0, %v3495_v27 }
 0xa7b   :  { %3496 = vrcp.f32 %v2308_v1 }
 0xa85   :  { %v3497_v50 = vpop.eup %3496 }
 0xa86   :  { %2312 = vst.msk [vmem:[#allocation25] sm:$0x3] %vm2311_vm11, %v3497_v50 }
 0xaa9   :  { %v2644_v45 = vpop.f32.mrb[16].mxu1 }
 0xaaa   :  { %v2645_v58 = vadd.f32 %v2644_v45, %v2574_v56  ;;  %v2646_v16 = vpop.f32.mrb[17].mxu1 }
 0xaab   :  { %v2647_v0 = vadd.f32 %v2646_v16, %v2576_v57 }
 0xaac   :  { %v2651_v59 = vmul.f32 1.442695, %v2645_v58  ;;  %vm2649_vm12 = vcmp.gt.f32.partialorder %v2645_v58, 0.0 }
 0xaad   :  { %v2653_v25 = vmul.f32 1.442695, %v2647_v0  ;;  %vm2650_vm13 = vcmp.gt.f32.partialorder %v2647_v0, 0.0 }
 0xaae   :  { %3498 = vpow2.f32 %v2651_v59 }
 0xaaf   :  { %3500 = vpow2.f32 %v2653_v25 }
 0xab8   :  { %v3499_v60 = vpop.eup %3498 }
 0xab9   :  { %v3501_v61 = vpop.eup %3500  ;;  %v2841_v62 = vadd.f32 -1.0, %v3499_v60 }
 0xaba   :  { %v2842_v63 = vadd.f32 -1.0, %v3501_v61 }
 0xabb   :  { %v2657_v19 = vmul.f32 1.6732632, %v2841_v62 }
 0xabc   :  { %v2658_v40 = vmul.f32 1.6732632, %v2842_v63 }
 0xabd   :  { %v2659_v6 = vsel %vm2649_vm12, %v2645_v58, %v2657_v19 }
 0xabe   :  { %v2660_v47 = vsel %vm2650_vm13, %v2647_v0, %v2658_v40  ;;  %v2661_v48 = vmul.f32 1.050701, %v2659_v6 }
 0xabf   :  { %v2662_v2 = vmul.f32 1.050701, %v2660_v47 }
 0xac1   :  { %2766 = vmatprep.mubr.f32.mxu0 %v2662_v2 }
 0xac2   :  { %2767 = vmatmul.mubr.f32.vlgmr.msra.gmra.mrb[8].mxu0 %v2661_v48 }
 0xac3   :  { %3823 = shalt.err (!%p3820_p4)
}
 0xac4   :  { %s4607_s14 = sld [smem:[#allocation43_spill]] }
 0xaca   :  { %s3824_s18 = scalar_lea.hbm %s4607_s14, 32 }
 0xacb   :  { %p3825_p5 = scmp.ne.s32.totalorder %s4607_s14, %s3824_s18  ;;  %p3828_p6 = scmp.lt.u32.totalorder %s3824_s18, %s4607_s14 }
 0xacd   :  { %p3830_p7 = pnand %p3828_p6, %p3825_p5 }
 0xacf   :  { %3833 = shalt.err (!%p3830_p7)
}
 0xad0   :  { %2783 = dma.vmem_to_hbm [thread:$0]  %s2781_s19, 32, %s4607_s14, [#allocation4]   ;;  %v2843_v4 = vld [vmem:[#allocation23] ss:$0 sm:$0xff] }
 0xad1   :  { %s4608_s2 = sld [smem:[#allocation44_spill]] }
 0xb95   :  { %v2930_v3 = vpop.f32.mrb[8].mxu0 }
 0xb96   :  { %v2931_v5 = vpop.f32.mrb[9].mxu0 }
 0xb97   :  { %v2932_v53 = vadd.f32 %v2931_v5, %v2930_v3 }
 0xb99   :  { %v2769_v7 = vadd.f32 %v2932_v53, %v2843_v4 }
 0xb9b   :  { %3502 = vtanh.f32 %v2769_v7 }
 0xba5   :  { %v3503_v9 = vpop.eup %3502 }
 0xba6   :  { %2773 = vst [vmem:[%s4608_s2] sm:$0x3] %v3503_v9 }
 0xba7   :  { %3850 = dma.done.wait [#allocation4], 32  }
 0xba8   :  { %3851 = vsyncadd [#allocation4], 4294967264 }
 0xba9   :  { %2791 = vsyncpa [#allocation3], 1 }
 0xbaa   :  { %2792 = vsyncpa [#allocation6], 1 }
 0xbab   :  { %2793 = vsyncpa [#allocation9], 1 }
 0xbac   :  { %2794 = vsyncpa [#allocation12], 1 }
 0xbad   :  { %2795 = vsyncpa [#allocation15], 1 }
 0xbae   :  { %2796 = vsyncpa [#allocation18], 1 }
 0xbaf   :  { %2797 = vsyncpa [#allocation21], 1 }
 0xbb0   :  { %2798 = vsyncpa [#allocation24], 1 }
 0xbb1   :  { %2799 = vsyncpa [#allocation4], 1 }

</bundles_post_ra>
